<compile_context>
chip_gen: v6e
topology: v6e:2x2x1
jax: 0.10.0
libtpu: 0.0.40
codegen_flags: <defaults>
</compile_context>

<pallas_src>
import functools
import math

import jax
import jax.numpy as jnp
from jax.experimental import pallas as pl
from jax.experimental.pallas import tpu as pltpu

_LANE = 128
_SUBLANE = 8


def _round_up(x, m):
    return ((x + m - 1) // m) * m


def _mlp_kernel(n_linear, x_ref, *refs):
    """Whole-MLP forward on one (TILE_B, 128) batch tile, all operands in VMEM.

    refs = (w0, b0, w1, b1, ..., w_{L-1}, b_{L-1}, out_ref)
    """
    out_ref = refs[-1]
    param_refs = refs[:-1]
    h = x_ref[...]
    for i in range(n_linear):
        w = param_refs[2 * i][...]          # (in_pad, out_pad), 128-multiples
        b = param_refs[2 * i + 1][...]      # (1, out_pad)
        h = jnp.dot(
            h, w,
            preferred_element_type=jnp.float32,
            precision=jax.lax.Precision.HIGHEST,
        ) + b
        if i != n_linear - 1:
            h = jnp.tanh(h)
    out_ref[...] = h.astype(out_ref.dtype)


def fcn_predictor_forward(x, weights, biases, *, tile_b=512):
    """x: (batch, input_dim); weights[i]: (in_i, out_i); biases[i]: (out_i,).

    Weights are stored pre-transposed as (in, out) so the kernel computes
    h @ W + b, matching PyTorch nn.Linear y = x @ W.T + b exactly.
    """
    n_linear = len(weights)
    batch, in_dim = x.shape
    out_dim = weights[-1].shape[1]

    # Pad feature dims to multiples of 128 (lane-dense, full MXU tiles).
    dims = [in_dim] + [w.shape[1] for w in weights]
    pdims = [_round_up(d, _LANE) for d in dims]

    # Batch tiling: large tiles amortize the ~0.35us/step overhead. NOTE: at
    # tile_b=512 the live (512,128) f32 activation fills the vreg file; drop to
    # 256 if bundle dumps show spill traffic dominating.
    tile_b = min(tile_b, _round_up(batch, _SUBLANE))
    pbatch = _round_up(batch, tile_b)

    xp = (
        jnp.zeros((pbatch, pdims[0]), jnp.float32)
        .at[:batch, :in_dim]
        .set(x.astype(jnp.float32))
    )

    args = [xp]
    in_specs = [pl.BlockSpec((tile_b, pdims[0]), lambda i: (i, 0))]
    for li, (w, b) in enumerate(zip(weights, biases)):
        wp = (
            jnp.zeros((pdims[li], pdims[li + 1]), jnp.float32)
            .at[: w.shape[0], : w.shape[1]]
            .set(w.astype(jnp.float32))
        )
        bp = (
            jnp.zeros((1, pdims[li + 1]), jnp.float32)
            .at[:, : b.shape[0]]
            .set(b.astype(jnp.float32))
        )
        args.append(wp)
        args.append(bp)
        # Constant index_map: parameter blocks are DMA'd once and stay resident
        # in VMEM across all batch tiles.
        in_specs.append(
            pl.BlockSpec((pdims[li], pdims[li + 1]), lambda i: (0, 0))
        )
        in_specs.append(pl.BlockSpec((1, pdims[li + 1]), lambda i: (0, 0)))

    grid = (pbatch // tile_b,)

    flops = 2 * batch * sum(w.shape[0] * w.shape[1] for w in weights)
    transcendentals = batch * sum(w.shape[1] for w in weights[:-1])
    bytes_accessed = 4 * (
        xp.size + sum(a.size for a in args[1:]) + pbatch * pdims[-1]
    )

    out_padded = pl.pallas_call(
        functools.partial(_mlp_kernel, n_linear),
        out_shape=jax.ShapeDtypeStruct((pbatch, pdims[-1]), jnp.float32),
        grid=grid,
        in_specs=in_specs,
        out_specs=pl.BlockSpec((tile_b, pdims[-1]), lambda i: (i, 0)),
        compiler_params=pltpu.CompilerParams(
            dimension_semantics=("parallel",),
        ),
        cost_estimate=pl.CostEstimate(
            flops=flops,
            transcendentals=transcendentals,
            bytes_accessed=bytes_accessed,
        ),
    )(*args)

    return out_padded[:batch, :out_dim]


def init_fcn_params(key, n_layers, layer_width, input_dim):
    """Deterministic init mimicking nn.Linear default U(-1/sqrt(fan_in), +)."""
    widths = [input_dim] + [layer_width] * n_layers + [input_dim]
    weights, biases = [], []
    for w_in, w_out in zip(widths[:-1], widths[1:]):
        key, kw, kb = jax.random.split(key, 3)
        bound = 1.0 / math.sqrt(w_in)
        # stored pre-transposed: (in_features, out_features)
        weights.append(
            jax.random.uniform(kw, (w_in, w_out), jnp.float32, -bound, bound)
        )
        biases.append(
            jax.random.uniform(kb, (w_out,), jnp.float32, -bound, bound)
        )
    return weights, biases


def _reference_forward(x, weights, biases):
    h = x
    n = len(weights)
    for i, (w, b) in enumerate(zip(weights, biases)):
        h = jnp.dot(h, w, precision=jax.lax.Precision.HIGHEST) + b
        if i != n - 1:
            h = jnp.tanh(h)
    return h


if __name__ == "__main__":
    key = jax.random.PRNGKey(0)

    # Small shapes consistent with the module: flat feature vectors.
    batch, input_dim, layer_width, n_layers = 8, 16, 32, 3

    key, k_x, k_p = jax.random.split(key, 3)
    x = jax.random.normal(k_x, (batch, input_dim), jnp.float32)
    weights, biases = init_fcn_params(k_p, n_layers, layer_width, input_dim)

    out = fcn_predictor_forward(x, weights, biases)
    out = jax.block_until_ready(out)

    ref = _reference_forward(x, weights, biases)
    assert out.shape == (batch, input_dim)
    assert jnp.allclose(out, ref, atol=1e-5, rtol=1e-5)

    print("KERNEL_OK")
</pallas_src>

<mosaic_0001>
module attributes {stable_mosaic.version = 11 : i64} {
  func.func @_mlp_kernel(%arg0: i32, %arg1: memref<8x128xf32, #tpu.memory_space<vmem>>, %arg2: memref<128x128xf32, #tpu.memory_space<vmem>>, %arg3: memref<1x128xf32, #tpu.memory_space<vmem>>, %arg4: memref<128x128xf32, #tpu.memory_space<vmem>>, %arg5: memref<1x128xf32, #tpu.memory_space<vmem>>, %arg6: memref<128x128xf32, #tpu.memory_space<vmem>>, %arg7: memref<1x128xf32, #tpu.memory_space<vmem>>, %arg8: memref<128x128xf32, #tpu.memory_space<vmem>>, %arg9: memref<1x128xf32, #tpu.memory_space<vmem>>, %arg10: memref<8x128xf32, #tpu.memory_space<vmem>>) attributes {dimension_semantics = [#tpu.dimension_semantics<parallel>], iteration_bounds = array<i64: 1>, scalar_prefetch = 0 : i64, scratch_operands = 0 : i64, tpu.core_type = #tpu.core_type<tc>, window_params = [{transform_indices = @transform_0, window_bounds = array<i64: 8, 128>}, {pipeline_mode = #tpu.pipeline_mode<synchronous>, transform_indices = @transform_1, window_bounds = array<i64: 128, 128>}, {pipeline_mode = #tpu.pipeline_mode<synchronous>, transform_indices = @transform_2, window_bounds = array<i64: 1, 128>}, {pipeline_mode = #tpu.pipeline_mode<synchronous>, transform_indices = @transform_3, window_bounds = array<i64: 128, 128>}, {pipeline_mode = #tpu.pipeline_mode<synchronous>, transform_indices = @transform_4, window_bounds = array<i64: 1, 128>}, {pipeline_mode = #tpu.pipeline_mode<synchronous>, transform_indices = @transform_5, window_bounds = array<i64: 128, 128>}, {pipeline_mode = #tpu.pipeline_mode<synchronous>, transform_indices = @transform_6, window_bounds = array<i64: 1, 128>}, {pipeline_mode = #tpu.pipeline_mode<synchronous>, transform_indices = @transform_7, window_bounds = array<i64: 128, 128>}, {pipeline_mode = #tpu.pipeline_mode<synchronous>, transform_indices = @transform_8, window_bounds = array<i64: 1, 128>}, {transform_indices = @transform_9, window_bounds = array<i64: 8, 128>}]} {
    %c0 = arith.constant 0 : index
    %c0_0 = arith.constant 0 : index
    %0 = vector.load %arg1[%c0, %c0_0] : memref<8x128xf32, #tpu.memory_space<vmem>>, vector<8x128xf32>
    %c0_1 = arith.constant 0 : index
    %c0_2 = arith.constant 0 : index
    %1 = vector.load %arg2[%c0_1, %c0_2] : memref<128x128xf32, #tpu.memory_space<vmem>>, vector<128x128xf32>
    %c0_3 = arith.constant 0 : index
    %c0_4 = arith.constant 0 : index
    %2 = vector.load %arg3[%c0_3, %c0_4] : memref<1x128xf32, #tpu.memory_space<vmem>>, vector<1x128xf32>
    %cst = arith.constant dense<0.000000e+00> : vector<8x128xf32>
    %3 = tpu.matmul %0, %1, %cst {dimension_numbers = #tpu.dot_dimension_numbers<[1], [0], [0], [1], [0, 0, 1, 1], [], []>, precision = #tpu.contract_precision<fp32>} : vector<8x128xf32>, vector<128x128xf32>, vector<8x128xf32> -> vector<8x128xf32>
    %4 = vector.broadcast %2 : vector<1x128xf32> to vector<8x128xf32>
    %5 = arith.addf %3, %4 : vector<8x128xf32>
    %6 = math.tanh %5 : vector<8x128xf32>
    %c0_5 = arith.constant 0 : index
    %c0_6 = arith.constant 0 : index
    %7 = vector.load %arg4[%c0_5, %c0_6] : memref<128x128xf32, #tpu.memory_space<vmem>>, vector<128x128xf32>
    %c0_7 = arith.constant 0 : index
    %c0_8 = arith.constant 0 : index
    %8 = vector.load %arg5[%c0_7, %c0_8] : memref<1x128xf32, #tpu.memory_space<vmem>>, vector<1x128xf32>
    %cst_9 = arith.constant dense<0.000000e+00> : vector<8x128xf32>
    %9 = tpu.matmul %6, %7, %cst_9 {dimension_numbers = #tpu.dot_dimension_numbers<[1], [0], [0], [1], [0, 0, 1, 1], [], []>, precision = #tpu.contract_precision<fp32>} : vector<8x128xf32>, vector<128x128xf32>, vector<8x128xf32> -> vector<8x128xf32>
    %10 = vector.broadcast %8 : vector<1x128xf32> to vector<8x128xf32>
    %11 = arith.addf %9, %10 : vector<8x128xf32>
    %12 = math.tanh %11 : vector<8x128xf32>
    %c0_10 = arith.constant 0 : index
    %c0_11 = arith.constant 0 : index
    %13 = vector.load %arg6[%c0_10, %c0_11] : memref<128x128xf32, #tpu.memory_space<vmem>>, vector<128x128xf32>
    %c0_12 = arith.constant 0 : index
    %c0_13 = arith.constant 0 : index
    %14 = vector.load %arg7[%c0_12, %c0_13] : memref<1x128xf32, #tpu.memory_space<vmem>>, vector<1x128xf32>
    %cst_14 = arith.constant dense<0.000000e+00> : vector<8x128xf32>
    %15 = tpu.matmul %12, %13, %cst_14 {dimension_numbers = #tpu.dot_dimension_numbers<[1], [0], [0], [1], [0, 0, 1, 1], [], []>, precision = #tpu.contract_precision<fp32>} : vector<8x128xf32>, vector<128x128xf32>, vector<8x128xf32> -> vector<8x128xf32>
    %16 = vector.broadcast %14 : vector<1x128xf32> to vector<8x128xf32>
    %17 = arith.addf %15, %16 : vector<8x128xf32>
    %18 = math.tanh %17 : vector<8x128xf32>
    %c0_15 = arith.constant 0 : index
    %c0_16 = arith.constant 0 : index
    %19 = vector.load %arg8[%c0_15, %c0_16] : memref<128x128xf32, #tpu.memory_space<vmem>>, vector<128x128xf32>
    %c0_17 = arith.constant 0 : index
    %c0_18 = arith.constant 0 : index
    %20 = vector.load %arg9[%c0_17, %c0_18] : memref<1x128xf32, #tpu.memory_space<vmem>>, vector<1x128xf32>
    %cst_19 = arith.constant dense<0.000000e+00> : vector<8x128xf32>
    %21 = tpu.matmul %18, %19, %cst_19 {dimension_numbers = #tpu.dot_dimension_numbers<[1], [0], [0], [1], [0, 0, 1, 1], [], []>, precision = #tpu.contract_precision<fp32>} : vector<8x128xf32>, vector<128x128xf32>, vector<8x128xf32> -> vector<8x128xf32>
    %22 = vector.broadcast %20 : vector<1x128xf32> to vector<8x128xf32>
    %23 = arith.addf %21, %22 : vector<8x128xf32>
    %c0_20 = arith.constant 0 : index
    %c0_21 = arith.constant 0 : index
    %24 = vector.load %arg10[%c0_20, %c0_21] : memref<8x128xf32, #tpu.memory_space<vmem>>, vector<8x128xf32>
    tpu.vector_store %arg10[%c0_20, %c0_21], %23 {strides = array<i32>} : memref<8x128xf32, #tpu.memory_space<vmem>>, vector<8x128xf32>,
    return
  }
  func.func @transform_0(%arg0: i32) -> (i32, i32) {
    %c0_i32 = arith.constant 0 : i32
    %c0_i32_0 = arith.constant 0 : i32
    return %arg0, %c0_i32 : i32, i32
  }
  func.func @transform_1(%arg0: i32) -> (i32, i32) {
    %c0_i32 = arith.constant 0 : i32
    %c0_i32_0 = arith.constant 0 : i32
    %c0_i32_1 = arith.constant 0 : i32
    return %c0_i32, %c0_i32_0 : i32, i32
  }
  func.func @transform_2(%arg0: i32) -> (i32, i32) {
    %c0_i32 = arith.constant 0 : i32
    %c0_i32_0 = arith.constant 0 : i32
    %c0_i32_1 = arith.constant 0 : i32
    return %c0_i32, %c0_i32_0 : i32, i32
  }
  func.func @transform_3(%arg0: i32) -> (i32, i32) {
    %c0_i32 = arith.constant 0 : i32
    %c0_i32_0 = arith.constant 0 : i32
    %c0_i32_1 = arith.constant 0 : i32
    return %c0_i32, %c0_i32_0 : i32, i32
  }
  func.func @transform_4(%arg0: i32) -> (i32, i32) {
    %c0_i32 = arith.constant 0 : i32
    %c0_i32_0 = arith.constant 0 : i32
    %c0_i32_1 = arith.constant 0 : i32
    return %c0_i32, %c0_i32_0 : i32, i32
  }
  func.func @transform_5(%arg0: i32) -> (i32, i32) {
    %c0_i32 = arith.constant 0 : i32
    %c0_i32_0 = arith.constant 0 : i32
    %c0_i32_1 = arith.constant 0 : i32
    return %c0_i32, %c0_i32_0 : i32, i32
  }
  func.func @transform_6(%arg0: i32) -> (i32, i32) {
    %c0_i32 = arith.constant 0 : i32
    %c0_i32_0 = arith.constant 0 : i32
    %c0_i32_1 = arith.constant 0 : i32
    return %c0_i32, %c0_i32_0 : i32, i32
  }
  func.func @transform_7(%arg0: i32) -> (i32, i32) {
    %c0_i32 = arith.constant 0 : i32
    %c0_i32_0 = arith.constant 0 : i32
    %c0_i32_1 = arith.constant 0 : i32
    return %c0_i32, %c0_i32_0 : i32, i32
  }
  func.func @transform_8(%arg0: i32) -> (i32, i32) {
    %c0_i32 = arith.constant 0 : i32
    %c0_i32_0 = arith.constant 0 : i32
    %c0_i32_1 = arith.constant 0 : i32
    return %c0_i32, %c0_i32_0 : i32, i32
  }
  func.func @transform_9(%arg0: i32) -> (i32, i32) {
    %c0_i32 = arith.constant 0 : i32
    %c0_i32_0 = arith.constant 0 : i32
    return %arg0, %c0_i32 : i32, i32
  }
}

</mosaic_0001>

<bundles_post_ra>
// kernel: tpu_custom_call.1
= control target key start
LH: loop header
LB: loop body
LE: loop exit
PB: predicated region body
PF: predicated region fallthrough
CT: control target
= control target key end

     0   :  { %14 = vsyncpa [#allocation3], 0  ;;  %s5715_s0 = inlined_call_operand.hbm [shape: f32[8,128], index: 0, kind: input, shape index: {}]   ;;  %s5716_s1 = inlined_call_operand.hbm [shape: f32[128,128], index: 1, kind: input, shape index: {}]   ;;  %s5717_s2 = inlined_call_operand.vmem [shape: f32[1,128], index: 2, kind: input, shape index: {}]   ;;  %s5718_s3 = inlined_call_operand.hbm [shape: f32[128,128], index: 3, kind: input, shape index: {}]   ;;  %s5719_s4 = inlined_call_operand.vmem [shape: f32[1,128], index: 4, kind: input, shape index: {}]   ;;  %s5720_s5 = inlined_call_operand.hbm [shape: f32[128,128], index: 5, kind: input, shape index: {}]   ;;  %s5721_s6 = inlined_call_operand.vmem [shape: f32[1,128], index: 6, kind: input, shape index: {}]   ;;  %s5722_s7 = inlined_call_operand.hbm [shape: f32[128,128], index: 7, kind: input, shape index: {}]   ;;  %s5723_s8 = inlined_call_operand.vmem [shape: f32[1,128], index: 8, kind: input, shape index: {}]   ;;  %s5724_s9 = inlined_call_operand.hbm [shape: f32[8,128], index: 9, kind: output, shape index: {}]  }
   0x1   :  { %15 = vsyncpa [#allocation6], 0 }
   0x2   :  { %16 = vsyncpa [#allocation9], 0 }
   0x3   :  { %17 = vsyncpa [#allocation4], 0  ;;  %s4173_s30 = smov [#allocation5]  }
   0x4   :  { %s33_s10 = sshll.u32 %s4173_s30, 4  ;;  %s34_s10 = int_to_ptr.vmem [resolvable:$true] %s33_s10 }
   0x5   :  { %s4053_s11 = scalar_lea.vmem %s34_s10, 2048  ;;  %p4058_p1 = scmp.lt.s32.totalorder %s34_s10, %s34_s10 }
   0x6   :  { %p4054_p0 = scmp.ne.s32.totalorder %s34_s10, %s4053_s11  ;;  %p4059_p2 = scmp.lt.s32.totalorder %s4053_s11, %s4053_s11 }
   0x8   :  { %p4060_p3 = por %p4059_p2, %p4058_p1 }
   0xa   :  { %p4061_p4 = pnand %p4060_p3, %p4054_p0 }
   0xc   :  { %4064 = shalt.err (!%p4061_p4)
}
   0xd   :  { %s4174_s12 = smov 128   ;;  %s4175_s13 = smov 8  }
   0xe   :  { %39 = dma.hbm_to_vmem [thread:$0]  %s5716_s1, 2048, %s34_s10, [#allocation6], %s4174_s12, %s4174_s12, %s4175_s13  }
   0xf   :  { %s4176_s16 = smov [#allocation8]   ;;  %s4177_s18 = smov [#allocation2]  }
  0x10   :  { %s61_s17 = sshll.u32 %s4176_s16, 4  ;;  %s24_s19 = sshll.u32 %s4177_s18, 4  ;;  %s62_s17 = int_to_ptr.vmem [resolvable:$true] %s61_s17  ;;  %s25_s19 = int_to_ptr.vmem [resolvable:$true] %s24_s19 }
  0x11   :  { %s4073_s20 = scalar_lea.vmem %s62_s17, 2048  ;;  %p4078_p6 = scmp.lt.s32.totalorder %s62_s17, %s62_s17 }
  0x12   :  { %p4074_p5 = scmp.ne.s32.totalorder %s62_s17, %s4073_s20  ;;  %p4079_p7 = scmp.lt.s32.totalorder %s4073_s20, %s4073_s20 }
  0x14   :  { %p4080_p8 = por %p4079_p7, %p4078_p6 }
  0x16   :  { %p4081_p9 = pnand %p4080_p8, %p4074_p5 }
  0x18   :  { %4084 = shalt.err (!%p4081_p9)
}
  0x19   :  { %67 = dma.hbm_to_vmem [thread:$0]  %s5720_s5, 2048, %s62_s17, [#allocation9], %s4174_s12, %s4174_s12, %s4175_s13  }
  0x1a   :  { %s4093_s1 = scalar_lea.vmem %s25_s19, 128  ;;  %p4098_p11 = scmp.lt.s32.totalorder %s25_s19, %s25_s19 }
  0x1b   :  { %p4094_p10 = scmp.ne.s32.totalorder %s25_s19, %s4093_s1  ;;  %p4099_p12 = scmp.lt.s32.totalorder %s4093_s1, %s4093_s1 }
  0x1d   :  { %p4100_p13 = por %p4099_p12, %p4098_p11 }
  0x1f   :  { %p4101_p0 = pnand %p4100_p13, %p4094_p10 }
  0x21   :  { %4104 = shalt.err (!%p4101_p0)
}
  0x22   :  { %27 = dma.hbm_to_vmem [thread:$0]  %s5715_s0, 128, %s25_s19, [#allocation3]  }
  0x23   :  { %s4178_s25 = smov [#allocation7]   ;;  %s4179_s27 = smov [#allocation10]  }
  0x24   :  { %s47_s26 = sshll.u32 %s4178_s25, 4  ;;  %s75_s28 = sshll.u32 %s4179_s27, 4  ;;  %s48_s26 = int_to_ptr.vmem [resolvable:$true] %s47_s26  ;;  %s76_s28 = int_to_ptr.vmem [resolvable:$true] %s75_s28 }
  0x25   :  { %s4113_s29 = scalar_lea.vmem %s48_s26, 2048  ;;  %p4118_p2 = scmp.lt.s32.totalorder %s48_s26, %s48_s26 }
  0x26   :  { %p4114_p1 = scmp.ne.s32.totalorder %s48_s26, %s4113_s29  ;;  %p4119_p3 = scmp.lt.s32.totalorder %s4113_s29, %s4113_s29 }
  0x28   :  { %p4120_p4 = por %p4119_p3, %p4118_p2 }
  0x2a   :  { %p4121_p5 = pnand %p4120_p4, %p4114_p1 }
  0x2c   :  { %4124 = shalt.err (!%p4121_p5)
}
  0x2d   :  { %53 = dma.hbm_to_vmem [thread:$0]  %s5718_s3, 2048, %s48_s26, [#allocation6], %s4174_s12, %s4174_s12, %s4175_s13  }
  0x2e   :  { %s4133_s0 = scalar_lea.vmem %s76_s28, 2048  ;;  %p4138_p7 = scmp.lt.s32.totalorder %s76_s28, %s76_s28 }
  0x2f   :  { %p4134_p6 = scmp.ne.s32.totalorder %s76_s28, %s4133_s0  ;;  %p4139_p8 = scmp.lt.s32.totalorder %s4133_s0, %s4133_s0 }
  0x31   :  { %p4140_p9 = por %p4139_p8, %p4138_p7 }
  0x33   :  { %p4141_p10 = pnand %p4140_p9, %p4134_p6 }
  0x35   :  { %4144 = shalt.err (!%p4141_p10)
}
  0x36   :  { %81 = dma.hbm_to_vmem [thread:$0]  %s5722_s7, 2048, %s76_s28, [#allocation9], %s4174_s12, %s4174_s12, %s4175_s13  }
  0x37   :  { %4165 = dma.done.wait [#allocation3], 128  }
  0x38   :  { %4166 = vsyncadd [#allocation3], 4294967168 }
  0x39   :  { %4167 = dma.done.wait [#allocation6], 4096  }
  0x3a   :  { %4168 = vsyncadd [#allocation6], 4294963200 }
  0x3b   :  { %4169 = dma.done.wait [#allocation9], 4096  }
  0x3c   :  { %4170 = vsyncadd [#allocation9], 4294963200  ;;  %v4180_v0 = vmov 0.0   ;;  %vm4181_vm0 = vmmov 0   ;;  %v115_v1 = vld [vmem:[#allocation5 + $0x78] sm:$0xff]  ;;  %v114_v2 = vld [vmem:[#allocation5 + $0x70] sm:$0xff] }
  0x3d   :  { %3189 = vmatprep.subr.mxu0 %v4180_v0  ;;  %3224 = vmatprep.subr.mxu1 %v4180_v0  ;;  %v113_v3 = vld [vmem:[#allocation5 + $0x68] sm:$0xff]  ;;  %v4266_v4 = vand.u32 4294901760, %v115_v1  ;;  %v4268_v5 = vand.u32 4294901760, %v114_v2  ;;  %v112_v7 = vld [vmem:[#allocation5 + $0x60] sm:$0xff]  ;;  %v111_v8 = vld [vmem:[#allocation5 + $0x58] sm:$0xff]  ;;  %s4182_s15 = smov [#allocation11]  }
  0x3e   :  { %3221 = vmatprep.mubr.msk.f32.mxu0 %vm4181_vm0, %v4180_v0  ;;  %3256 = vmatprep.mubr.msk.f32.mxu1 %vm4181_vm0, %v4180_v0  ;;  %v4270_v6 = vand.u32 4294901760, %v113_v3  ;;  %v110_v9 = vld [vmem:[#allocation5 + $0x50] sm:$0xff]  ;;  %v4272_v10 = vand.u32 4294901760, %v112_v7  ;;  %v4274_v11 = vand.u32 4294901760, %v111_v8  ;;  %v109_v13 = vld [vmem:[#allocation5 + $0x48] sm:$0xff]  ;;  %v108_v14 = vld [vmem:[#allocation5 + $0x40] sm:$0xff] }
  0x3f   :  { %v4276_v12 = vand.u32 4294901760, %v110_v9  ;;  %3190 = vmatpush3.msra.mxu0 %v4266_v4  ;;  %v4280_v15 = vsub.f32 %v115_v1, %v4266_v4  ;;  %v4283_v16 = vsub.f32 %v114_v2, %v4268_v5  ;;  %v4285_v17 = vand.u32 4294901760, %v109_v13  ;;  %v107_v19 = vld [vmem:[#allocation5 + $0x38] sm:$0xff]  ;;  %v106_v26 = vld [vmem:[#allocation5 + $0x30] sm:$0xff]  ;;  %v105_v36 = vld [vmem:[#allocation5 + $0x28] sm:$0xff]  ;;  %s2766_s16 = sshll.u32 %s4182_s15, 4  ;;  %s2767_s16 = int_to_ptr.vmem [resolvable:$true] %s2766_s16 }
  0x40   :  { %v4288_v18 = vsub.f32 %v113_v3, %v4270_v6  ;;  %3191 = vmatprep.subr.mxu0 %v4180_v0  ;;  %v4292_v20 = vsub.f32 %v112_v7, %v4272_v10  ;;  %v4295_v21 = vsub.f32 %v111_v8, %v4274_v11  ;;  %v4301_v25 = vand.u32 4294901760, %v108_v14  ;;  %v104_v41 = vld [vmem:[#allocation5 + $0x20] sm:$0xff]  ;;  %v103_v49 = vld [vmem:[#allocation5 + $0x18] sm:$0xff]  ;;  %v102_v54 = vld [vmem:[#allocation5 + $0x10] sm:$0xff]  ;;  %s4145_s17 = scalar_lea.vmem %s2767_s16, 128  ;;  %p4150_p12 = scmp.lt.s32.totalorder %s2767_s16, %s2767_s16 }
  0x41   :  { %3192 = vmatpush3.msra.mxu0 %v4268_v5  ;;  %v217_v22 = vand.u32 4294901760, %v4280_v15  ;;  %v224_v23 = vand.u32 4294901760, %v4283_v16  ;;  %v4305_v28 = vand.u32 4294901760, %v107_v19  ;;  %v4309_v30 = vsub.f32 %v110_v9, %v4276_v12  ;;  %v99_v50 = vld [vmem:[#allocation2] sm:$0xff]  ;;  %v101_v60 = vld [vmem:[#allocation5 + $0x8] sm:$0xff]  ;;  %v100_v7 = vld [vmem:[#allocation5] sm:$0xff]  ;;  %p4146_p11 = scmp.ne.s32.totalorder %s2767_s16, %s4145_s17  ;;  %p4151_p13 = scmp.lt.s32.totalorder %s4145_s17, %s4145_s17 }
  0x42   :  { %v231_v24 = vand.u32 4294901760, %v4288_v18  ;;  %3193 = vmatprep.subr.mxu0 %v4180_v0  ;;  %v238_v27 = vand.u32 4294901760, %v4292_v20  ;;  %v245_v29 = vand.u32 4294901760, %v4295_v21  ;;  %v4322_v34 = vsub.f32 %v109_v13, %v4285_v17 }
  0x43   :  { %3194 = vmatpush3.msra.mxu0 %v4270_v6  ;;  %v218_v31 = vsub.f32 %v4280_v15, %v217_v22  ;;  %v225_v32 = vsub.f32 %v4283_v16, %v224_v23  ;;  %v4325_v35 = vand.u32 4294901760, %v106_v26  ;;  %v252_v40 = vand.u32 4294901760, %v4309_v30  ;;  %p4152_p0 = por %p4151_p13, %p4150_p12 }
  0x44   :  { %v232_v33 = vsub.f32 %v4288_v18, %v231_v24  ;;  %3195 = vmatprep.subr.mxu0 %v4180_v0  ;;  %v239_v39 = vsub.f32 %v4292_v20, %v238_v27  ;;  %v246_v42 = vsub.f32 %v4295_v21, %v245_v29  ;;  %v4337_v43 = vsub.f32 %v108_v14, %v4301_v25 }
  0x45   :  { %3196 = vmatpush3.msra.mxu0 %v4272_v10  ;;  %v219_v37 = vand.u32 4294901760, %v218_v31  ;;  %v226_v38 = vand.u32 4294901760, %v225_v32  ;;  %v4340_v45 = vand.u32 4294901760, %v105_v36  ;;  %v259_v46 = vand.u32 4294901760, %v4322_v34  ;;  %p4153_p1 = pnand %p4152_p0, %p4146_p11 }
  0x46   :  { %3197 = vmatprep.subr.mxu0 %v4180_v0  ;;  %v233_v44 = vand.u32 4294901760, %v232_v33  ;;  %v4344_v47 = vsub.f32 %v107_v19, %v4305_v28  ;;  %v4348_v48 = vand.u32 4294901760, %v104_v41  ;;  %v240_v51 = vand.u32 4294901760, %v239_v39 }
  0x47   :  { %3198 = vmatpush3.msra.mxu0 %v4274_v11  ;;  %3225 = vmatpush3.msra.mxu1 %v219_v37  ;;  %v253_v52 = vsub.f32 %v4309_v30, %v252_v40  ;;  %v266_v53 = vand.u32 4294901760, %v4337_v43  ;;  %v4356_v55 = vsub.f32 %v106_v26, %v4325_v35  ;;  %v247_v56 = vand.u32 4294901760, %v246_v42 }
  0x48   :  { %3199 = vmatprep.subr.mxu0 %v4180_v0  ;;  %3226 = vmatprep.subr.mxu1 %v4180_v0  ;;  %v273_v57 = vand.u32 4294901760, %v4344_v47  ;;  %v260_v58 = vsub.f32 %v4322_v34, %v259_v46  ;;  %v4365_v59 = vand.u32 4294901760, %v103_v49  ;;  %v4368_v61 = vsub.f32 %v105_v36, %v4340_v45 }
  0x49   :  { %3200 = vmatpush3.msra.mxu0 %v4276_v12  ;;  %3227 = vmatpush3.msra.mxu1 %v226_v38  ;;  %v4370_v62 = vand.u32 4294901760, %v99_v50  ;;  %v4374_v63 = vand.u32 4294901760, %v102_v54  ;;  %v254_v1 = vand.u32 4294901760, %v253_v52  ;;  %v267_v2 = vsub.f32 %v4337_v43, %v266_v53 }
  0x4a   :  { %3201 = vmatprep.subr.mxu0 %v4180_v0  ;;  %3228 = vmatprep.subr.mxu1 %v4180_v0  ;;  %v280_v3 = vand.u32 4294901760, %v4356_v55  ;;  %v4382_v8 = vsub.f32 %v104_v41, %v4348_v48  ;;  %v274_v9 = vsub.f32 %v4344_v47, %v273_v57  ;;  %v4389_v13 = vand.u32 4294901760, %v101_v60 }
  0x4b   :  { %3202 = vmatpush3.msra.mxu0 %v4285_v17  ;;  %3229 = vmatpush3.msra.mxu1 %v233_v44  ;;  %v261_v14 = vand.u32 4294901760, %v260_v58  ;;  %v287_v19 = vand.u32 4294901760, %v4368_v61  ;;  %v4394_v26 = vsub.f32 %v99_v50, %v4370_v62  ;;  %v4397_v31 = vsub.f32 %v103_v49, %v4365_v59 }
  0x4c   :  { %3203 = vmatprep.subr.mxu0 %v4180_v0  ;;  %3230 = vmatprep.subr.mxu1 %v4180_v0  ;;  %v4401_v32 = vand.u32 4294901760, %v100_v7  ;;  %v268_v33 = vand.u32 4294901760, %v267_v2  ;;  %v281_v36 = vsub.f32 %v4356_v55, %v280_v3  ;;  %v294_v37 = vand.u32 4294901760, %v4382_v8 }
  0x4d   :  { %3204 = vmatpush3.msra.mxu0 %v4301_v25  ;;  %3231 = vmatpush3.msra.mxu1 %v240_v51  ;;  %v4409_v38 = vsub.f32 %v102_v54, %v4374_v63  ;;  %v275_v39 = vand.u32 4294901760, %v274_v9  ;;  %v288_v41 = vsub.f32 %v4368_v61, %v287_v19  ;;  %v206_v42 = vand.u32 4294901760, %v4394_v26 }
  0x4e   :  { %3205 = vmatprep.subr.mxu0 %v4180_v0  ;;  %3232 = vmatprep.subr.mxu1 %v4180_v0  ;;  %v301_v44 = vand.u32 4294901760, %v4397_v31  ;;  %v4420_v49 = vsub.f32 %v101_v60, %v4389_v13  ;;  %v282_v50 = vand.u32 4294901760, %v281_v36  ;;  %v295_v51 = vsub.f32 %v4382_v8, %v294_v37 }
  0x4f   :  { %3206 = vmatpush3.msra.mxu0 %v4305_v28  ;;  %3233 = vmatpush3.msra.mxu1 %v247_v56  ;;  %v308_v52 = vand.u32 4294901760, %v4409_v38  ;;  %v4430_v54 = vsub.f32 %v100_v7, %v4401_v32  ;;  %v289_v56 = vand.u32 4294901760, %v288_v41  ;;  %v207_v58 = vsub.f32 %v4394_v26, %v206_v42 }
  0x50   :  { %3207 = vmatprep.subr.mxu0 %v4180_v0  ;;  %3234 = vmatprep.subr.mxu1 %v4180_v0  ;;  %v302_v60 = vsub.f32 %v4397_v31, %v301_v44  ;;  %v296_v2 = vand.u32 4294901760, %v295_v51 }
  0x51   :  { %3208 = vmatpush3.msra.mxu0 %v4325_v35  ;;  %3235 = vmatpush3.msra.mxu1 %v254_v1  ;;  %v315_v1 = vand.u32 4294901760, %v4420_v49  ;;  %v309_v7 = vsub.f32 %v4409_v38, %v308_v52  ;;  %v322_v9 = vand.u32 4294901760, %v4430_v54 }
  0x52   :  { %3209 = vmatprep.subr.mxu0 %v4180_v0  ;;  %3236 = vmatprep.subr.mxu1 %v4180_v0 }
  0x53   :  { %3210 = vmatpush3.msra.mxu0 %v4340_v45  ;;  %3237 = vmatpush3.msra.mxu1 %v261_v14  ;;  %v208_v14 = vand.u32 4294901760, %v207_v58  ;;  %v316_v36 = vsub.f32 %v4420_v49, %v315_v1  ;;  %v323_v41 = vsub.f32 %v4430_v54, %v322_v9  ;;  %v770_v58 = vld [vmem:[#allocation7 + $0x28] sm:$0xff] }
  0x54   :  { %3211 = vmatprep.subr.mxu0 %v4180_v0  ;;  %3238 = vmatprep.subr.mxu1 %v4180_v0 }
  0x55   :  { %3212 = vmatpush3.msra.mxu0 %v4348_v48  ;;  %3239 = vmatpush3.msra.mxu1 %v268_v33  ;;  %v303_v33 = vand.u32 4294901760, %v302_v60  ;;  %v324_v51 = vand.u32 4294901760, %v323_v41 }
  0x56   :  { %3213 = vmatprep.subr.mxu0 %v4180_v0  ;;  %3240 = vmatprep.subr.mxu1 %v4180_v0 }
  0x57   :  { %3214 = vmatpush3.msra.mxu0 %v4365_v59  ;;  %3241 = vmatpush3.msra.mxu1 %v275_v39  ;;  %v310_v39 = vand.u32 4294901760, %v309_v7  ;;  %v4731_v7 = vand.u32 4294901760, %v770_v58 }
  0x58   :  { %3215 = vmatprep.subr.mxu0 %v4180_v0  ;;  %3242 = vmatprep.subr.mxu1 %v4180_v0 }
  0x59   :  { %3216 = vmatpush3.msra.mxu0 %v4374_v63  ;;  %3243 = vmatpush3.msra.mxu1 %v282_v50  ;;  %v317_v50 = vand.u32 4294901760, %v316_v36 }
  0x5a   :  { %3217 = vmatprep.subr.mxu0 %v4180_v0  ;;  %3244 = vmatprep.subr.mxu1 %v4180_v0 }
  0x5b   :  { %3218 = vmatpush3.msra.mxu0 %v4389_v13  ;;  %3245 = vmatpush3.msra.mxu1 %v289_v56 }
  0x5c   :  { %3219 = vmatprep.subr.mxu0 %v4180_v0  ;;  %3246 = vmatprep.subr.mxu1 %v4180_v0 }
  0x5d   :  { %3220 = vmatpush3.msra.mxu0 %v4401_v32  ;;  %3247 = vmatpush3.msra.mxu1 %v296_v2 }
  0x5e   :  { %3248 = vmatprep.subr.mxu1 %v4180_v0  ;;  %3259 = vmatprep.subr.mxu0 %v4180_v0 }
  0x5f   :  { %3222 = vmatmul.mubr.f32.vlgmr.msra.gmra.mxu0 %v208_v14  ;;  %3249 = vmatpush3.msra.mxu1 %v303_v33  ;;  %v769_v14 = vld [vmem:[#allocation7 + $0x20] sm:$0xff] }
  0x60   :  { %3260 = vmatpush3.msra.mxu0 %v4280_v15  ;;  %3250 = vmatprep.subr.mxu1 %v4180_v0  ;;  %v4746_v41 = vand.u32 4294901760, %v769_v14 }
  0x61   :  { %3261 = vmatprep.subr.mxu0 %v4180_v0  ;;  %3251 = vmatpush3.msra.mxu1 %v310_v39  ;;  %v4744_v39 = vsub.f32 %v770_v58, %v4731_v7 }
  0x62   :  { %3262 = vmatpush3.msra.mxu0 %v4283_v16  ;;  %3252 = vmatprep.subr.mxu1 %v4180_v0 }
  0x63   :  { %3263 = vmatprep.subr.mxu0 %v4180_v0  ;;  %3253 = vmatpush3.msra.mxu1 %v317_v50 }
  0x64   :  { %3264 = vmatpush3.msra.mxu0 %v4288_v18  ;;  %3254 = vmatprep.subr.mxu1 %v4180_v0 }
  0x65   :  { %3265 = vmatprep.subr.mxu0 %v4180_v0  ;;  %3255 = vmatpush3.msra.mxu1 %v324_v51  ;;  %v768_v51 = vld [vmem:[#allocation7 + $0x18] sm:$0xff] }
  0x66   :  { %3266 = vmatpush3.msra.mxu0 %v4292_v20  ;;  %3257 = vmatmul.mubr.f32.vlgmr.msra.gmra.mxu1 %v4370_v62 }
  0x67   :  { %3267 = vmatprep.subr.mxu0 %v4180_v0  ;;  %3294 = vmatprep.subr.mxu1 %v4180_v0 }
  0x68   :  { %3268 = vmatpush3.msra.mxu0 %v4295_v21  ;;  %3295 = vmatpush3.msra.mxu1 %v4266_v4 }
  0x69   :  { %3269 = vmatprep.subr.mxu0 %v4180_v0  ;;  %3296 = vmatprep.subr.mxu1 %v4180_v0 }
  0x6a   :  { %3270 = vmatpush3.msra.mxu0 %v4309_v30  ;;  %3297 = vmatpush3.msra.mxu1 %v4268_v5 }
  0x6b   :  { %3271 = vmatprep.subr.mxu0 %v4180_v0  ;;  %3298 = vmatprep.subr.mxu1 %v4180_v0 }
  0x6c   :  { %3272 = vmatpush3.msra.mxu0 %v4322_v34  ;;  %3299 = vmatpush3.msra.mxu1 %v4270_v6  ;;  %v776_v34 = vld [vmem:[#allocation7 + $0x58] sm:$0xff] }
  0x6d   :  { %3273 = vmatprep.subr.mxu0 %v4180_v0  ;;  %3300 = vmatprep.subr.mxu1 %v4180_v0 }
  0x6e   :  { %3274 = vmatpush3.msra.mxu0 %v4337_v43  ;;  %3301 = vmatpush3.msra.mxu1 %v4272_v10  ;;  %v775_v43 = vld [vmem:[#allocation7 + $0x50] sm:$0xff] }
  0x6f   :  { %3275 = vmatprep.subr.mxu0 %v4180_v0  ;;  %3302 = vmatprep.subr.mxu1 %v4180_v0 }
  0x70   :  { %3276 = vmatpush3.msra.mxu0 %v4344_v47  ;;  %3303 = vmatpush3.msra.mxu1 %v4274_v11  ;;  %v4678_v47 = vand.u32 4294901760, %v775_v43 }
  0x71   :  { %3277 = vmatprep.subr.mxu0 %v4180_v0  ;;  %3304 = vmatprep.subr.mxu1 %v4180_v0 }
  0x72   :  { %3278 = vmatpush3.msra.mxu0 %v4356_v55  ;;  %3305 = vmatpush3.msra.mxu1 %v4276_v12 }
  0x73   :  { %3279 = vmatprep.subr.mxu0 %v4180_v0  ;;  %3306 = vmatprep.subr.mxu1 %v4180_v0 }
  0x74   :  { %3280 = vmatpush3.msra.mxu0 %v4368_v61  ;;  %3307 = vmatpush3.msra.mxu1 %v4285_v17  ;;  %v773_v61 = vld [vmem:[#allocation7 + $0x40] sm:$0xff] }
  0x75   :  { %3281 = vmatprep.subr.mxu0 %v4180_v0  ;;  %3308 = vmatprep.subr.mxu1 %v4180_v0 }
  0x76   :  { %3282 = vmatpush3.msra.mxu0 %v4382_v8  ;;  %3309 = vmatpush3.msra.mxu1 %v4301_v25 }
  0x77   :  { %3283 = vmatprep.subr.mxu0 %v4180_v0  ;;  %3310 = vmatprep.subr.mxu1 %v4180_v0 }
  0x78   :  { %3284 = vmatpush3.msra.mxu0 %v4397_v31  ;;  %3311 = vmatpush3.msra.mxu1 %v4305_v28 }
  0x79   :  { %3285 = vmatprep.subr.mxu0 %v4180_v0  ;;  %3312 = vmatprep.subr.mxu1 %v4180_v0 }
  0x7a   :  { %3286 = vmatpush3.msra.mxu0 %v4409_v38  ;;  %3313 = vmatpush3.msra.mxu1 %v4325_v35 }
  0x7b   :  { %3287 = vmatprep.subr.mxu0 %v4180_v0  ;;  %3314 = vmatprep.subr.mxu1 %v4180_v0 }
  0x7c   :  { %3288 = vmatpush3.msra.mxu0 %v4420_v49  ;;  %3315 = vmatpush3.msra.mxu1 %v4340_v45 }
  0x7d   :  { %3289 = vmatprep.subr.mxu0 %v4180_v0  ;;  %3316 = vmatprep.subr.mxu1 %v4180_v0 }
  0x7e   :  { %3290 = vmatpush3.msra.mxu0 %v4430_v54  ;;  %3291 = vmatprep.mubr.msk.f32.mxu0 %vm4181_vm0, %v4180_v0 }
  0x7f   :  { %3317 = vmatpush3.msra.mxu1 %v4348_v48  ;;  %3292 = vmatmul.mubr.f32.vlgmr.msra.gmra.mxu0 %v4394_v26 }
  0x80   :  { %3318 = vmatprep.subr.mxu1 %v4180_v0  ;;  %3329 = vmatprep.subr.mxu0 %v4180_v0 }
  0x81   :  { %3319 = vmatpush3.msra.mxu1 %v4365_v59  ;;  %3330 = vmatpush3.msra.mxu0 %v217_v22 }
  0x82   :  { %3320 = vmatprep.subr.mxu1 %v4180_v0  ;;  %3331 = vmatprep.subr.mxu0 %v4180_v0 }
  0x83   :  { %3321 = vmatpush3.msra.mxu1 %v4374_v63  ;;  %3332 = vmatpush3.msra.mxu0 %v224_v23 }
  0x84   :  { %3322 = vmatprep.subr.mxu1 %v4180_v0  ;;  %3333 = vmatprep.subr.mxu0 %v4180_v0 }
  0x85   :  { %3323 = vmatpush3.msra.mxu1 %v4389_v13  ;;  %3334 = vmatpush3.msra.mxu0 %v231_v24 }
  0x86   :  { %3324 = vmatprep.subr.mxu1 %v4180_v0  ;;  %3335 = vmatprep.subr.mxu0 %v4180_v0 }
  0x87   :  { %3325 = vmatpush3.msra.mxu1 %v4401_v32  ;;  %3326 = vmatprep.mubr.msk.f32.mxu1 %vm4181_vm0, %v4180_v0 }
  0x88   :  { %3336 = vmatpush3.msra.mxu0 %v238_v27  ;;  %3327 = vmatmul.mubr.f32.vlgmr.msra.gmra.mxu1 %v206_v42  ;;  %v771_v42 = vld [vmem:[#allocation7 + $0x30] sm:$0xff] }
  0x89   :  { %3337 = vmatprep.subr.mxu0 %v4180_v0  ;;  %3364 = vmatprep.subr.mxu1 %v4180_v0  ;;  %v4721_v54 = vand.u32 4294901760, %v771_v42 }
  0x8a   :  { %3338 = vmatpush3.msra.mxu0 %v245_v29  ;;  %3365 = vmatpush3.msra.mxu1 %v4266_v4  ;;  %v780_v4 = vld [vmem:[#allocation7 + $0x78] sm:$0xff]  ;;  %v777_v29 = vld [vmem:[#allocation7 + $0x60] sm:$0xff] }
  0x8b   :  { %3339 = vmatprep.subr.mxu0 %v4180_v0  ;;  %3366 = vmatprep.subr.mxu1 %v4180_v0  ;;  %v4664_v30 = vand.u32 4294901760, %v777_v29  ;;  %v4729_v2 = vsub.f32 %v771_v42, %v4721_v54 }
  0x8c   :  { %3340 = vmatpush3.msra.mxu0 %v252_v40  ;;  %3367 = vmatpush3.msra.mxu1 %v4268_v5  ;;  %v779_v5 = vld [vmem:[#allocation7 + $0x70] sm:$0xff]  ;;  %v4670_v40 = vand.u32 4294901760, %v776_v34 }
  0x8d   :  { %3341 = vmatprep.subr.mxu0 %v4180_v0  ;;  %3368 = vmatprep.subr.mxu1 %v4180_v0  ;;  %v945_v36 = vand.u32 4294901760, %v4729_v2 }
  0x8e   :  { %3342 = vmatpush3.msra.mxu0 %v259_v46  ;;  %3369 = vmatpush3.msra.mxu1 %v4270_v6  ;;  %v778_v6 = vld [vmem:[#allocation7 + $0x68] sm:$0xff]  ;;  %v4676_v46 = vsub.f32 %v776_v34, %v4670_v40 }
  0x8f   :  { %3343 = vmatprep.subr.mxu0 %v4180_v0  ;;  %3370 = vmatprep.subr.mxu1 %v4180_v0  ;;  %v766_v34 = vld [vmem:[#allocation7 + $0x8] sm:$0xff] }
  0x90   :  { %3344 = vmatpush3.msra.mxu0 %v266_v53  ;;  %3371 = vmatpush3.msra.mxu1 %v4272_v10  ;;  %v4629_v10 = vand.u32 4294901760, %v780_v4  ;;  %v910_v55 = vand.u32 4294901760, %v4676_v46 }
  0x91   :  { %3345 = vmatprep.subr.mxu0 %v4180_v0  ;;  %3372 = vmatprep.subr.mxu1 %v4180_v0 }
  0x92   :  { %3346 = vmatpush3.msra.mxu0 %v273_v57  ;;  %3373 = vmatpush3.msra.mxu1 %v4274_v11  ;;  %v4631_v11 = vand.u32 4294901760, %v779_v5  ;;  %v4636_v15 = vsub.f32 %v780_v4, %v4629_v10  ;;  %v4687_v57 = vsub.f32 %v775_v43, %v4678_v47  ;;  %v765_v43 = vld [vmem:[#allocation7] sm:$0xff] }
  0x93   :  { %3347 = vmatprep.subr.mxu0 %v4180_v0  ;;  %3374 = vmatprep.subr.mxu1 %v4180_v0 }
  0x94   :  { %3348 = vmatpush3.msra.mxu0 %v280_v3  ;;  %3375 = vmatpush3.msra.mxu1 %v4276_v12  ;;  %v4633_v12 = vand.u32 4294901760, %v778_v6  ;;  %v4639_v16 = vsub.f32 %v779_v5, %v4631_v11  ;;  %v882_v18 = vand.u32 4294901760, %v4636_v15  ;;  %v917_v3 = vand.u32 4294901760, %v4687_v57 }
  0x95   :  { %3349 = vmatprep.subr.mxu0 %v4180_v0  ;;  %3376 = vmatprep.subr.mxu1 %v4180_v0  ;;  %v946_v5 = vsub.f32 %v4729_v2, %v945_v36 }
  0x96   :  { %3350 = vmatpush3.msra.mxu0 %v287_v19  ;;  %3377 = vmatpush3.msra.mxu1 %v4285_v17  ;;  %v4642_v17 = vsub.f32 %v778_v6, %v4633_v12  ;;  %v889_v20 = vand.u32 4294901760, %v4639_v16  ;;  %v883_v22 = vsub.f32 %v4636_v15, %v882_v18  ;;  %v772_v19 = vld [vmem:[#allocation7 + $0x38] sm:$0xff]  ;;  %v918_v31 = vsub.f32 %v4687_v57, %v917_v3 }
  0x97   :  { %3351 = vmatprep.subr.mxu0 %v4180_v0  ;;  %3378 = vmatprep.subr.mxu1 %v4180_v0  ;;  %v952_v6 = vand.u32 4294901760, %v4744_v39 }
  0x98   :  { %3352 = vmatpush3.msra.mxu0 %v294_v37  ;;  %3379 = vmatpush3.msra.mxu1 %v4301_v25  ;;  %v896_v21 = vand.u32 4294901760, %v4642_v17  ;;  %v890_v23 = vsub.f32 %v4639_v16, %v889_v20  ;;  %v884_v25 = vand.u32 4294901760, %v883_v22  ;;  %v4708_v37 = vand.u32 4294901760, %v772_v19 }
  0x99   :  { %3353 = vmatprep.subr.mxu0 %v4180_v0  ;;  %3380 = vmatprep.subr.mxu1 %v4180_v0  ;;  %v4756_v22 = vsub.f32 %v769_v14, %v4746_v41 }
  0x9a   :  { %3354 = vmatpush3.msra.mxu0 %v301_v44  ;;  %3381 = vmatpush3.msra.mxu1 %v4305_v28  ;;  %v897_v24 = vsub.f32 %v4642_v17, %v896_v21  ;;  %v891_v27 = vand.u32 4294901760, %v890_v23  ;;  %v919_v44 = vand.u32 4294901760, %v918_v31  ;;  %v4759_v23 = vand.u32 4294901760, %v768_v51 }
  0x9b   :  { %3355 = vmatprep.subr.mxu0 %v4180_v0  ;;  %3382 = vmatprep.subr.mxu1 %v4180_v0 }
  0x9c   :  { %3356 = vmatpush3.msra.mxu0 %v308_v52  ;;  %3383 = vmatpush3.msra.mxu1 %v4325_v35  ;;  %v898_v28 = vand.u32 4294901760, %v897_v24  ;;  %v4668_v35 = vsub.f32 %v777_v29, %v4664_v30  ;;  %v4719_v52 = vsub.f32 %v772_v19, %v4708_v37  ;;  %v767_v24 = vld [vmem:[#allocation7 + $0x10] sm:$0xff] }
  0x9d   :  { %3357 = vmatprep.subr.mxu0 %v4180_v0  ;;  %3384 = vmatprep.subr.mxu1 %v4180_v0  ;;  %v4767_v29 = vand.u32 4294901760, %v767_v24 }
  0x9e   :  { %3358 = vmatpush3.msra.mxu0 %v315_v1  ;;  %3385 = vmatpush3.msra.mxu1 %v4340_v45  ;;  %v903_v45 = vand.u32 4294901760, %v4668_v35  ;;  %v938_v1 = vand.u32 4294901760, %v4719_v52 }
  0x9f   :  { %3359 = vmatprep.subr.mxu0 %v4180_v0  ;;  %3386 = vmatprep.subr.mxu1 %v4180_v0  ;;  %v4783_v19 = vsub.f32 %v767_v24, %v4767_v29 }
  0xa0   :  { %3360 = vmatpush3.msra.mxu0 %v322_v9  ;;  %3361 = vmatprep.mubr.msk.f32.mxu0 %vm4181_vm0, %v4180_v0  ;;  %v904_v53 = vsub.f32 %v4668_v35, %v903_v45  ;;  %v939_v33 = vsub.f32 %v4719_v52, %v938_v1 }
  0xa1   :  { %3387 = vmatpush3.msra.mxu1 %v4348_v48  ;;  %3362 = vmatmul.mubr.f32.vlgmr.msra.gmra.mxu0 %v4370_v62  ;;  %v774_v48 = vld [vmem:[#allocation7 + $0x48] sm:$0xff] }
  0xa2   :  { %3388 = vmatprep.subr.mxu1 %v4180_v0  ;;  %3396 = vmatprep.mubr.msk.f32.mxu1 %vm4181_vm0, %v4180_v0  ;;  %v940_v4 = vand.u32 4294901760, %v939_v33 }
  0xa3   :  { %3389 = vmatpush3.msra.mxu1 %v4365_v59  ;;  %3399 = vmatprep.subr.mxu0 %v4180_v0  ;;  %v4689_v59 = vand.u32 4294901760, %v774_v48 }
  0xa4   :  { %3390 = vmatprep.subr.mxu1 %v4180_v0  ;;  %3431 = vmatprep.mubr.msk.f32.mxu0 %vm4181_vm0, %v4180_v0 }
  0xa5   :  { %3391 = vmatpush3.msra.mxu1 %v4374_v63  ;;  %3400 = vmatpush3.msra.mxu0 %v4629_v10  ;;  %v911_v63 = vsub.f32 %v4676_v46, %v910_v55  ;;  %v4698_v8 = vsub.f32 %v774_v48, %v4689_v59  ;;  %v4771_v48 = vsub.f32 %v768_v51, %v4759_v23 }
  0xa6   :  { %3392 = vmatprep.subr.mxu1 %v4180_v0  ;;  %3401 = vmatprep.subr.mxu0 %v4180_v0 }
  0xa7   :  { %3393 = vmatpush3.msra.mxu1 %v4389_v13  ;;  %3402 = vmatpush3.msra.mxu0 %v4631_v11  ;;  %v4701_v13 = vand.u32 4294901760, %v773_v61  ;;  %v912_v26 = vand.u32 4294901760, %v911_v63 }
  0xa8   :  { %3394 = vmatprep.subr.mxu1 %v4180_v0  ;;  %3403 = vmatprep.subr.mxu0 %v4180_v0 }
  0xa9   :  { %3395 = vmatpush3.msra.mxu1 %v4401_v32  ;;  %3404 = vmatpush3.msra.mxu0 %v4633_v12  ;;  %v924_v32 = vand.u32 4294901760, %v4698_v8  ;;  %v4712_v38 = vsub.f32 %v773_v61, %v4701_v13  ;;  %v4775_v61 = vand.u32 4294901760, %v765_v43 }
  0xaa   :  { %3397 = vmatmul.mubr.f32.vlgmr.msra.gmra.mxu1 %v4370_v62  ;;  %3434 = vmatprep.subr.mxu1 %v4180_v0  ;;  %v905_v62 = vand.u32 4294901760, %v904_v53  ;;  %v4773_v53 = vand.u32 4294901760, %v766_v34 }
  0xab   :  { %3466 = vmatprep.mubr.msk.f32.mxu1 %vm4181_vm0, %v4180_v0  ;;  %3405 = vmatprep.subr.mxu0 %v4180_v0  ;;  %v925_v49 = vsub.f32 %v4698_v8, %v924_v32  ;;  %v931_v56 = vand.u32 4294901760, %v4712_v38  ;;  %v4791_v42 = vsub.f32 %v765_v43, %v4775_v61 }
  0xac   :  { %3435 = vmatpush3.msra.mxu1 %v884_v25  ;;  %3406 = vmatpush3.msra.mxu0 %v4664_v30  ;;  %v947_v25 = vand.u32 4294901760, %v946_v5  ;;  %v4788_v31 = vsub.f32 %v766_v34, %v4773_v53 }
  0xad   :  { %3436 = vmatprep.subr.mxu1 %v4180_v0  ;;  %3407 = vmatprep.subr.mxu0 %v4180_v0  ;;  %v926_v60 = vand.u32 4294901760, %v925_v49  ;;  %v932_v9 = vsub.f32 %v4712_v38, %v931_v56  ;;  %v5727_v49 = vand.u32 4294901760, %v4783_v19 }
  0xae   :  { %3437 = vmatpush3.msra.mxu1 %v891_v27  ;;  %3408 = vmatpush3.msra.mxu0 %v4670_v40  ;;  %v953_v27 = vsub.f32 %v4744_v39, %v952_v6 }
  0xaf   :  { %3438 = vmatprep.subr.mxu1 %v4180_v0  ;;  %3409 = vmatprep.subr.mxu0 %v4180_v0  ;;  %v933_v50 = vand.u32 4294901760, %v932_v9  ;;  %v5725_v9 = vand.u32 4294901760, %v4791_v42  ;;  %v974_v14 = vsub.f32 %v4783_v19, %v5727_v49 }
  0xb0   :  { %3439 = vmatpush3.msra.mxu1 %v898_v28  ;;  %3410 = vmatpush3.msra.mxu0 %v4678_v47  ;;  %v959_v28 = vand.u32 4294901760, %v4756_v22 }
  0xb1   :  { %3440 = vmatprep.subr.mxu1 %v4180_v0  ;;  %3411 = vmatprep.subr.mxu0 %v4180_v0  ;;  %v988_v51 = vsub.f32 %v4791_v42, %v5725_v9 }
  0xb2   :  { %3412 = vmatpush3.msra.mxu0 %v4689_v59  ;;  %3441 = vmatpush3.msra.mxu1 %v905_v62  ;;  %v954_v62 = vand.u32 4294901760, %v953_v27  ;;  %v960_v63 = vsub.f32 %v4756_v22, %v959_v28 }
  0xb3   :  { %3413 = vmatprep.subr.mxu0 %v4180_v0  ;;  %3442 = vmatprep.subr.mxu1 %v4180_v0  ;;  %v989_v24 = vand.u32 4294901760, %v988_v51 }
  0xb4   :  { %3414 = vmatpush3.msra.mxu0 %v4701_v13  ;;  %3443 = vmatpush3.msra.mxu1 %v912_v26  ;;  %v5728_v26 = vand.u32 4294901760, %v4771_v48 }
  0xb5   :  { %3415 = vmatprep.subr.mxu0 %v4180_v0  ;;  %3444 = vmatprep.subr.mxu1 %v4180_v0 }
  0xb6   :  { %3416 = vmatpush3.msra.mxu0 %v4708_v37  ;;  %3445 = vmatpush3.msra.mxu1 %v919_v44  ;;  %v961_v44 = vand.u32 4294901760, %v960_v63  ;;  %v967_v58 = vsub.f32 %v4771_v48, %v5728_v26 }
  0xb7   :  { %3417 = vmatprep.subr.mxu0 %v4180_v0  ;;  %3446 = vmatprep.subr.mxu1 %v4180_v0 }
  0xb8   :  { %3418 = vmatpush3.msra.mxu0 %v4721_v54  ;;  %3447 = vmatpush3.msra.mxu1 %v926_v60  ;;  %v5726_v60 = vand.u32 4294901760, %v4788_v31  ;;  %v968_v33 = vand.u32 4294901760, %v967_v58 }
  0xb9   :  { %3419 = vmatprep.subr.mxu0 %v4180_v0  ;;  %3448 = vmatprep.subr.mxu1 %v4180_v0 }
  0xba   :  { %3420 = vmatpush3.msra.mxu0 %v4731_v7  ;;  %3449 = vmatpush3.msra.mxu1 %v933_v50  ;;  %v981_v50 = vsub.f32 %v4788_v31, %v5726_v60 }
  0xbb   :  { %3421 = vmatprep.subr.mxu0 %v4180_v0  ;;  %3450 = vmatprep.subr.mxu1 %v4180_v0 }
  0xbc   :  { %3422 = vmatpush3.msra.mxu0 %v4746_v41  ;;  %3451 = vmatpush3.msra.mxu1 %v940_v4  ;;  %v975_v4 = vand.u32 4294901760, %v974_v14  ;;  %v982_v5 = vand.u32 4294901760, %v981_v50  ;;  %v2777_v14 = vld [vmem:[%s5717_s2] ss:$0 sm:$0xff] }
  0xbd   :  { %3423 = vmatprep.subr.mxu0 %v4180_v0  ;;  %3452 = vmatprep.subr.mxu1 %v4180_v0 }
  0xbe   :  { %3424 = vmatpush3.msra.mxu0 %v4759_v23  ;;  %3453 = vmatpush3.msra.mxu1 %v947_v25 }
  0xbf   :  { %3425 = vmatprep.subr.mxu0 %v4180_v0  ;;  %3454 = vmatprep.subr.mxu1 %v4180_v0 }
  0xc0   :  { %3426 = vmatpush3.msra.mxu0 %v4767_v29  ;;  %3455 = vmatpush3.msra.mxu1 %v954_v62 }
  0xc1   :  { %3427 = vmatprep.subr.mxu0 %v4180_v0  ;;  %3456 = vmatprep.subr.mxu1 %v4180_v0 }
  0xc2   :  { %3428 = vmatpush3.msra.mxu0 %v4773_v53  ;;  %3457 = vmatpush3.msra.mxu1 %v961_v44 }
  0xc3   :  { %3429 = vmatprep.subr.mxu0 %v4180_v0  ;;  %3458 = vmatprep.subr.mxu1 %v4180_v0 }
  0xc4   :  { %3430 = vmatpush3.msra.mxu0 %v4775_v61  ;;  %3459 = vmatpush3.msra.mxu1 %v968_v33 }
  0xc5   :  { %3469 = vmatprep.subr.mxu0 %v4180_v0  ;;  %3460 = vmatprep.subr.mxu1 %v4180_v0 }
  0xc6   :  { %3461 = vmatpush3.msra.mxu1 %v975_v4 }
  0xc7   :  { %3462 = vmatprep.subr.mxu1 %v4180_v0 }
  0xc8   :  { %3463 = vmatpush3.msra.mxu1 %v982_v5 }
  0xc9   :  { %3464 = vmatprep.subr.mxu1 %v4180_v0 }
  0xca   :  { %3465 = vmatpush3.msra.mxu1 %v989_v24 }
  0xcb   :  { %3504 = vmatprep.subr.mxu1 %v4180_v0 }
 0x11f   :  { %v210_v25 = vpop.f32.mrf.mxu0 }
 0x120   :  { %v211_v33 = vadd.f32 %v2777_v14, %v210_v25 }
 0x121   :  { %v3223_v27 = vpop.f32.mrf.mxu0 }
 0x126   :  { %v361_v34 = vpop.f32.mrf.mxu1 }
 0x127   :  { %v362_v51 = vadd.f32 %v361_v34, %v211_v33 }
 0x128   :  { %v3258_v43 = vpop.f32.mrf.mxu1 }
 0x13f   :  { %v465_v62 = vpop.f32.mrf.mxu0 }
 0x140   :  { %v466_v5 = vadd.f32 %v465_v62, %v362_v51 }
 0x141   :  { %v3293_v63 = vpop.f32.mrf.mxu0 }
 0x148   :  { %v554_v44 = vpop.f32.mrf.mxu1 }
 0x149   :  { %v555_v24 = vadd.f32 %v554_v44, %v466_v5  ;;  %v1436_v44 = vld [vmem:[#allocation8 + $0x30] sm:$0xff] }
 0x14a   :  { %v3328_v58 = vpop.f32.mrf.mxu1 }
 0x161   :  { %v673_v50 = vpop.f32.mrf.mxu0 }
 0x162   :  { %v674_v9 = vadd.f32 %v673_v50, %v555_v24  ;;  %v5081_v50 = vand.u32 4294901760, %v1436_v44 }
 0x163   :  { %v3363_v4 = vpop.f32.mrf.mxu0 }
 0x164   :  { %v1435_v4 = vld [vmem:[#allocation8 + $0x28] sm:$0xff] }
 0x16a   :  { %v760_v60 = vpop.f32.mrf.mxu1 }
 0x16b   :  { %v761_v49 = vadd.f32 %v760_v60, %v674_v9 }
 0x16c   :  { %v3398_v27 = vpop.f32.mrf.mxu1 }
 0x16d   :  { %4039 = vtanh.f32 %v761_v49  ;;  %v5094_v27 = vsub.f32 %v1436_v44, %v5081_v50 }
 0x17a   :  { %v4040_v43 = vpop.eup %4039 }
 0x17b   :  { %v4824_v26 = vand.u32 4294901760, %v4040_v43 }
 0x17d   :  { %3467 = vmatmul.mubr.f32.vlgmr.msra.gmra.mxu1 %v4824_v26  ;;  %v4828_v63 = vsub.f32 %v4040_v43, %v4824_v26  ;;  %v5096_v43 = vand.u32 4294901760, %v1435_v4 }
 0x17e   :  { %3505 = vmatpush3.msra.mxu1 %v4629_v10  ;;  %3536 = vmatprep.mubr.msk.f32.mxu1 %vm4181_vm0, %v4180_v0 }
 0x17f   :  { %3506 = vmatprep.subr.mxu1 %v4180_v0  ;;  %v871_v25 = vand.u32 4294901760, %v4828_v63 }
 0x180   :  { %3507 = vmatpush3.msra.mxu1 %v4631_v11 }
 0x181   :  { %3508 = vmatprep.subr.mxu1 %v4180_v0  ;;  %v872_v49 = vsub.f32 %v4828_v63, %v871_v25 }
 0x182   :  { %3509 = vmatpush3.msra.mxu1 %v4633_v12 }
 0x183   :  { %3510 = vmatprep.subr.mxu1 %v4180_v0  ;;  %v873_v60 = vand.u32 4294901760, %v872_v49 }
 0x184   :  { %3511 = vmatpush3.msra.mxu1 %v4664_v30 }
 0x185   :  { %3512 = vmatprep.subr.mxu1 %v4180_v0  ;;  %3432 = vmatmul.mubr.f32.vlgmr.msra.gmra.mxu0 %v873_v60 }
 0x186   :  { %3470 = vmatpush3.msra.mxu0 %v4636_v15  ;;  %3513 = vmatpush3.msra.mxu1 %v4670_v40  ;;  %v5740_v15 = vand.u32 4294901760, %v4791_v42 }
 0x187   :  { %3471 = vmatprep.subr.mxu0 %v4180_v0  ;;  %3514 = vmatprep.subr.mxu1 %v4180_v0 }
 0x188   :  { %3472 = vmatpush3.msra.mxu0 %v4639_v16  ;;  %3515 = vmatpush3.msra.mxu1 %v4678_v47  ;;  %v1445_v16 = vld [vmem:[#allocation8 + $0x78] sm:$0xff] }
 0x189   :  { %3473 = vmatprep.subr.mxu0 %v4180_v0  ;;  %3516 = vmatprep.subr.mxu1 %v4180_v0 }
 0x18a   :  { %3474 = vmatpush3.msra.mxu0 %v4642_v17  ;;  %3517 = vmatpush3.msra.mxu1 %v4689_v59  ;;  %v1444_v17 = vld [vmem:[#allocation8 + $0x70] sm:$0xff] }
 0x18b   :  { %3475 = vmatprep.subr.mxu0 %v4180_v0  ;;  %3518 = vmatprep.subr.mxu1 %v4180_v0 }
 0x18c   :  { %3476 = vmatpush3.msra.mxu0 %v4668_v35  ;;  %3519 = vmatpush3.msra.mxu1 %v4701_v13 }
 0x18d   :  { %3477 = vmatprep.subr.mxu0 %v4180_v0  ;;  %3520 = vmatprep.subr.mxu1 %v4180_v0 }
 0x18e   :  { %3478 = vmatpush3.msra.mxu0 %v4676_v46  ;;  %3521 = vmatpush3.msra.mxu1 %v4708_v37 }
 0x18f   :  { %3479 = vmatprep.subr.mxu0 %v4180_v0  ;;  %3522 = vmatprep.subr.mxu1 %v4180_v0 }
 0x190   :  { %3480 = vmatpush3.msra.mxu0 %v4687_v57  ;;  %3523 = vmatpush3.msra.mxu1 %v4721_v54  ;;  %v1443_v57 = vld [vmem:[#allocation8 + $0x68] sm:$0xff] }
 0x191   :  { %3481 = vmatprep.subr.mxu0 %v4180_v0  ;;  %3524 = vmatprep.subr.mxu1 %v4180_v0 }
 0x192   :  { %3482 = vmatpush3.msra.mxu0 %v4698_v8  ;;  %3525 = vmatpush3.msra.mxu1 %v4731_v7 }
 0x193   :  { %3483 = vmatprep.subr.mxu0 %v4180_v0  ;;  %3526 = vmatprep.subr.mxu1 %v4180_v0 }
 0x194   :  { %3484 = vmatpush3.msra.mxu0 %v4712_v38  ;;  %3527 = vmatpush3.msra.mxu1 %v4746_v41 }
 0x195   :  { %3485 = vmatprep.subr.mxu0 %v4180_v0  ;;  %3528 = vmatprep.subr.mxu1 %v4180_v0 }
 0x196   :  { %3486 = vmatpush3.msra.mxu0 %v4719_v52  ;;  %3529 = vmatpush3.msra.mxu1 %v4759_v23 }
 0x197   :  { %3487 = vmatprep.subr.mxu0 %v4180_v0  ;;  %3530 = vmatprep.subr.mxu1 %v4180_v0 }
 0x198   :  { %3488 = vmatpush3.msra.mxu0 %v4729_v2  ;;  %3531 = vmatpush3.msra.mxu1 %v4767_v29 }
 0x199   :  { %3489 = vmatprep.subr.mxu0 %v4180_v0  ;;  %3532 = vmatprep.subr.mxu1 %v4180_v0 }
 0x19a   :  { %3490 = vmatpush3.msra.mxu0 %v4744_v39  ;;  %3533 = vmatpush3.msra.mxu1 %v4773_v53 }
 0x19b   :  { %3491 = vmatprep.subr.mxu0 %v4180_v0  ;;  %3534 = vmatprep.subr.mxu1 %v4180_v0 }
 0x19c   :  { %3492 = vmatpush3.msra.mxu0 %v4756_v22  ;;  %3535 = vmatpush3.msra.mxu1 %v4775_v61 }
 0x19d   :  { %3493 = vmatprep.subr.mxu0 %v4180_v0  ;;  %3537 = vmatmul.mubr.f32.vlgmr.msra.gmra.mxu1 %v871_v25  ;;  %v1434_v25 = vld [vmem:[#allocation8 + $0x20] sm:$0xff] }
 0x19e   :  { %3574 = vmatprep.subr.mxu1 %v4180_v0  ;;  %3494 = vmatpush3.msra.mxu0 %v4771_v48 }
 0x19f   :  { %3575 = vmatpush3.msra.mxu1 %v4629_v10  ;;  %3495 = vmatprep.subr.mxu0 %v4180_v0  ;;  %v5737_v10 = vand.u32 4294901760, %v4771_v48 }
 0x1a0   :  { %3576 = vmatprep.subr.mxu1 %v4180_v0  ;;  %3496 = vmatpush3.msra.mxu0 %v4783_v19 }
 0x1a1   :  { %3577 = vmatpush3.msra.mxu1 %v4631_v11  ;;  %3497 = vmatprep.subr.mxu0 %v4180_v0  ;;  %v5738_v11 = vand.u32 4294901760, %v4783_v19 }
 0x1a2   :  { %3578 = vmatprep.subr.mxu1 %v4180_v0  ;;  %3498 = vmatpush3.msra.mxu0 %v4788_v31 }
 0x1a3   :  { %3579 = vmatpush3.msra.mxu1 %v4633_v12  ;;  %3499 = vmatprep.subr.mxu0 %v4180_v0  ;;  %v5739_v12 = vand.u32 4294901760, %v4788_v31 }
 0x1a4   :  { %3580 = vmatprep.subr.mxu1 %v4180_v0  ;;  %3500 = vmatpush3.msra.mxu0 %v4791_v42 }
 0x1a5   :  { %3501 = vmatprep.mubr.msk.f32.mxu0 %vm4181_vm0, %v4180_v0  ;;  %3581 = vmatpush3.msra.mxu1 %v4664_v30 }
 0x1a6   :  { %3502 = vmatmul.mubr.f32.vlgmr.msra.gmra.mxu0 %v4828_v63  ;;  %3539 = vmatprep.subr.mxu0 %v4180_v0 }
 0x1a7   :  { %3582 = vmatprep.subr.mxu1 %v4180_v0  ;;  %3540 = vmatpush3.msra.mxu0 %v882_v18  ;;  %v4991_v18 = vand.u32 4294901760, %v1445_v16 }
 0x1a8   :  { %3583 = vmatpush3.msra.mxu1 %v4670_v40  ;;  %3541 = vmatprep.subr.mxu0 %v4180_v0 }
 0x1a9   :  { %3584 = vmatprep.subr.mxu1 %v4180_v0  ;;  %3542 = vmatpush3.msra.mxu0 %v889_v20  ;;  %v4993_v20 = vand.u32 4294901760, %v1444_v17 }
 0x1aa   :  { %3585 = vmatpush3.msra.mxu1 %v4678_v47  ;;  %3543 = vmatprep.subr.mxu0 %v4180_v0 }
 0x1ab   :  { %3586 = vmatprep.subr.mxu1 %v4180_v0  ;;  %3544 = vmatpush3.msra.mxu0 %v896_v21  ;;  %v4996_v21 = vsub.f32 %v1445_v16, %v4991_v18  ;;  %v4999_v30 = vsub.f32 %v1444_v17, %v4993_v20 }
 0x1ac   :  { %3587 = vmatpush3.msra.mxu1 %v4689_v59  ;;  %3545 = vmatprep.subr.mxu0 %v4180_v0  ;;  %v5015_v59 = vand.u32 4294901760, %v1443_v57 }
 0x1ad   :  { %3588 = vmatprep.subr.mxu1 %v4180_v0  ;;  %3546 = vmatpush3.msra.mxu0 %v903_v45  ;;  %v1547_v35 = vand.u32 4294901760, %v4996_v21  ;;  %v1554_v40 = vand.u32 4294901760, %v4999_v30 }
 0x1ae   :  { %3589 = vmatpush3.msra.mxu1 %v4701_v13  ;;  %3547 = vmatprep.subr.mxu0 %v4180_v0  ;;  %v5018_v8 = vsub.f32 %v1443_v57, %v5015_v59 }
 0x1af   :  { %3590 = vmatprep.subr.mxu1 %v4180_v0  ;;  %3548 = vmatpush3.msra.mxu0 %v910_v55  ;;  %v1548_v45 = vsub.f32 %v4996_v21, %v1547_v35  ;;  %v1555_v46 = vsub.f32 %v4999_v30, %v1554_v40 }
 0x1b0   :  { %3591 = vmatpush3.msra.mxu1 %v4708_v37  ;;  %3549 = vmatprep.subr.mxu0 %v4180_v0  ;;  %v1561_v37 = vand.u32 4294901760, %v5018_v8 }
 0x1b1   :  { %3592 = vmatprep.subr.mxu1 %v4180_v0  ;;  %3550 = vmatpush3.msra.mxu0 %v917_v3  ;;  %v1549_v47 = vand.u32 4294901760, %v1548_v45  ;;  %v1556_v55 = vand.u32 4294901760, %v1555_v46  ;;  %v1442_v3 = vld [vmem:[#allocation8 + $0x60] sm:$0xff] }
 0x1b2   :  { %3593 = vmatpush3.msra.mxu1 %v4721_v54  ;;  %3551 = vmatprep.subr.mxu0 %v4180_v0  ;;  %v5020_v13 = vand.u32 4294901760, %v1442_v3  ;;  %v1440_v54 = vld [vmem:[#allocation8 + $0x50] sm:$0xff] }
 0x1b3   :  { %3594 = vmatprep.subr.mxu1 %v4180_v0  ;;  %3552 = vmatpush3.msra.mxu0 %v924_v32  ;;  %v1441_v32 = vld [vmem:[#allocation8 + $0x58] sm:$0xff] }
 0x1b4   :  { %3595 = vmatpush3.msra.mxu1 %v4731_v7  ;;  %3553 = vmatprep.subr.mxu0 %v4180_v0  ;;  %v5026_v38 = vsub.f32 %v1442_v3, %v5020_v13  ;;  %v5028_v52 = vand.u32 4294901760, %v1441_v32  ;;  %v5039_v7 = vand.u32 4294901760, %v1440_v54 }
 0x1b5   :  { %3596 = vmatprep.subr.mxu1 %v4180_v0  ;;  %3554 = vmatpush3.msra.mxu0 %v931_v56  ;;  %v1562_v56 = vsub.f32 %v5018_v8, %v1561_v37 }
 0x1b6   :  { %3597 = vmatpush3.msra.mxu1 %v4746_v41  ;;  %3555 = vmatprep.subr.mxu0 %v4180_v0  ;;  %v5037_v2 = vsub.f32 %v1441_v32, %v5028_v52  ;;  %v5048_v22 = vsub.f32 %v1440_v54, %v5039_v7 }
 0x1b7   :  { %3598 = vmatprep.subr.mxu1 %v4180_v0  ;;  %3556 = vmatpush3.msra.mxu0 %v938_v1  ;;  %v1568_v1 = vand.u32 4294901760, %v5026_v38  ;;  %v1563_v39 = vand.u32 4294901760, %v1562_v56  ;;  %v1431_v56 = vld [vmem:[#allocation8 + $0x8] sm:$0xff] }
 0x1b8   :  { %3599 = vmatpush3.msra.mxu1 %v4759_v23  ;;  %3557 = vmatprep.subr.mxu0 %v4180_v0 }
 0x1b9   :  { %3600 = vmatprep.subr.mxu1 %v4180_v0  ;;  %3558 = vmatpush3.msra.mxu0 %v945_v36  ;;  %v1439_v36 = vld [vmem:[#allocation8 + $0x48] sm:$0xff]  ;;  %v1569_v41 = vsub.f32 %v5026_v38, %v1568_v1 }
 0x1ba   :  { %3601 = vmatpush3.msra.mxu1 %v4767_v29  ;;  %3559 = vmatprep.subr.mxu0 %v4180_v0  ;;  %v5051_v23 = vand.u32 4294901760, %v1439_v36 }
 0x1bb   :  { %3602 = vmatprep.subr.mxu1 %v4180_v0  ;;  %3560 = vmatpush3.msra.mxu0 %v952_v6  ;;  %v1575_v6 = vand.u32 4294901760, %v5037_v2  ;;  %v1570_v29 = vand.u32 4294901760, %v1569_v41  ;;  %v5135_v41 = vand.u32 4294901760, %v1431_v56 }
 0x1bc   :  { %3603 = vmatpush3.msra.mxu1 %v4773_v53  ;;  %3561 = vmatprep.subr.mxu0 %v4180_v0  ;;  %v1582_v53 = vand.u32 4294901760, %v5048_v22  ;;  %v5062_v19 = vsub.f32 %v1439_v36, %v5051_v23  ;;  %v1430_v36 = vld [vmem:[#allocation8] sm:$0xff] }
 0x1bd   :  { %3604 = vmatprep.subr.mxu1 %v4180_v0  ;;  %3562 = vmatpush3.msra.mxu0 %v959_v28  ;;  %v1438_v28 = vld [vmem:[#allocation8 + $0x40] sm:$0xff]  ;;  %v1576_v48 = vsub.f32 %v5037_v2, %v1575_v6 }
 0x1be   :  { %3605 = vmatpush3.msra.mxu1 %v4775_v61  ;;  %3606 = vmatprep.mubr.msk.f32.mxu1 %vm4181_vm0, %v4180_v0  ;;  %v5058_v61 = vand.u32 4294901760, %v1438_v28  ;;  %v1583_v42 = vsub.f32 %v5048_v22, %v1582_v53  ;;  %v1589_v62 = vand.u32 4294901760, %v5062_v19 }
 0x1bf   :  { %3563 = vmatprep.subr.mxu0 %v4180_v0  ;;  %3607 = vmatmul.mubr.f32.vlgmr.msra.gmra.mxu1 %v4824_v26  ;;  %v1577_v31 = vand.u32 4294901760, %v1576_v48 }
 0x1c0   :  { %3564 = vmatpush3.msra.mxu0 %v5737_v10  ;;  %3571 = vmatprep.mubr.msk.f32.mxu0 %vm4181_vm0, %v4180_v0  ;;  %v5069_v9 = vsub.f32 %v1438_v28, %v5058_v61  ;;  %v1584_v58 = vand.u32 4294901760, %v1583_v42  ;;  %v1590_v51 = vsub.f32 %v5062_v19, %v1589_v62  ;;  %v1610_v10 = vand.u32 4294901760, %v5094_v27 }
 0x1c1   :  { %3565 = vmatprep.subr.mxu0 %v4180_v0  ;;  %3644 = vmatprep.subr.mxu1 %v4180_v0  ;;  %v5137_v28 = vand.u32 4294901760, %v1430_v36  ;;  %v5150_v42 = vsub.f32 %v1431_v56, %v5135_v41 }
 0x1c2   :  { %3566 = vmatpush3.msra.mxu0 %v5738_v11  ;;  %3676 = vmatprep.mubr.msk.f32.mxu1 %vm4181_vm0, %v4180_v0  ;;  %v1596_v14 = vand.u32 4294901760, %v5069_v9  ;;  %v1591_v63 = vand.u32 4294901760, %v1590_v51  ;;  %v5106_v11 = vsub.f32 %v1435_v4, %v5096_v43  ;;  %v1611_v17 = vsub.f32 %v5094_v27, %v1610_v10 }
 0x1c3   :  { %3567 = vmatprep.subr.mxu0 %v4180_v0  ;;  %3645 = vmatpush3.msra.mxu1 %v1549_v47  ;;  %v5153_v44 = vsub.f32 %v1430_v36, %v5137_v28 }
 0x1c4   :  { %3568 = vmatpush3.msra.mxu0 %v5739_v12  ;;  %3646 = vmatprep.subr.mxu1 %v4180_v0  ;;  %v1597_v5 = vsub.f32 %v5069_v9, %v1596_v14  ;;  %v5109_v12 = vand.u32 4294901760, %v1434_v25  ;;  %v1617_v45 = vand.u32 4294901760, %v5106_v11  ;;  %v1612_v57 = vand.u32 4294901760, %v1611_v17 }
 0x1c5   :  { %3569 = vmatprep.subr.mxu0 %v4180_v0  ;;  %3647 = vmatpush3.msra.mxu1 %v1556_v55  ;;  %v1432_v55 = vld [vmem:[#allocation8 + $0x10] sm:$0xff] }
 0x1c6   :  { %3570 = vmatpush3.msra.mxu0 %v5740_v15  ;;  %3648 = vmatprep.subr.mxu1 %v4180_v0  ;;  %v1598_v49 = vand.u32 4294901760, %v1597_v5  ;;  %v1433_v15 = vld [vmem:[#allocation8 + $0x18] sm:$0xff]  ;;  %v5121_v47 = vsub.f32 %v1434_v25, %v5109_v12  ;;  %v1618_v3 = vsub.f32 %v5106_v11, %v1617_v45  ;;  %v5131_v54 = vand.u32 4294901760, %v1432_v55 }
 0x1c7   :  { %3572 = vmatmul.mubr.f32.vlgmr.msra.gmra.mxu0 %v4824_v26  ;;  %3609 = vmatprep.subr.mxu0 %v4180_v0  ;;  %v1437_v26 = vld [vmem:[#allocation8 + $0x38] sm:$0xff]  ;;  %v5117_v46 = vand.u32 4294901760, %v1433_v15  ;;  %v5730_v5 = vand.u32 4294901760, %v5150_v42 }
 0x1c8   :  { %3641 = vmatprep.mubr.msk.f32.mxu0 %vm4181_vm0, %v4180_v0  ;;  %3610 = vmatpush3.msra.mxu0 %v4991_v18  ;;  %v5071_v34 = vand.u32 4294901760, %v1437_v26 }
 0x1c9   :  { %3611 = vmatprep.subr.mxu0 %v4180_v0  ;;  %3649 = vmatpush3.msra.mxu1 %v1563_v39  ;;  %v5129_v32 = vsub.f32 %v1433_v15, %v5117_v46  ;;  %v1624_v39 = vand.u32 4294901760, %v5121_v47 }
 0x1ca   :  { %3612 = vmatpush3.msra.mxu0 %v4993_v20  ;;  %3650 = vmatprep.subr.mxu1 %v4180_v0  ;;  %v5079_v33 = vsub.f32 %v1437_v26, %v5071_v34  ;;  %v5143_v26 = vsub.f32 %v1432_v55, %v5131_v54 }
 0x1cb   :  { %3613 = vmatprep.subr.mxu0 %v4180_v0  ;;  %3651 = vmatpush3.msra.mxu1 %v1570_v29  ;;  %v1619_v29 = vand.u32 4294901760, %v1618_v3  ;;  %v5732_v48 = vand.u32 4294901760, %v5129_v32 }
 0x1cc   :  { %3614 = vmatpush3.msra.mxu0 %v5015_v59  ;;  %3652 = vmatprep.subr.mxu1 %v4180_v0  ;;  %v1603_v24 = vand.u32 4294901760, %v5079_v33  ;;  %v5731_v51 = vand.u32 4294901760, %v5143_v26 }
 0x1cd   :  { %3615 = vmatprep.subr.mxu0 %v4180_v0  ;;  %3653 = vmatpush3.msra.mxu1 %v1577_v31  ;;  %v1625_v31 = vsub.f32 %v5121_v47, %v1624_v39 }
 0x1ce   :  { %3616 = vmatpush3.msra.mxu0 %v5020_v13  ;;  %3654 = vmatprep.subr.mxu1 %v4180_v0  ;;  %v1604_v60 = vsub.f32 %v5079_v33, %v1603_v24 }
 0x1cf   :  { %3617 = vmatprep.subr.mxu0 %v4180_v0  ;;  %3655 = vmatpush3.msra.mxu1 %v1584_v58  ;;  %v1632_v58 = vsub.f32 %v5129_v32, %v5732_v48  ;;  %v1626_v4 = vand.u32 4294901760, %v1625_v31 }
 0x1d0   :  { %3618 = vmatpush3.msra.mxu0 %v5028_v52  ;;  %3656 = vmatprep.subr.mxu1 %v4180_v0  ;;  %v1605_v16 = vand.u32 4294901760, %v1604_v60  ;;  %v1646_v60 = vsub.f32 %v5150_v42, %v5730_v5 }
 0x1d1   :  { %3619 = vmatprep.subr.mxu0 %v4180_v0  ;;  %3657 = vmatpush3.msra.mxu1 %v1591_v63  ;;  %v5729_v63 = vand.u32 4294901760, %v5153_v44  ;;  %v1633_v25 = vand.u32 4294901760, %v1632_v58 }
 0x1d2   :  { %3620 = vmatpush3.msra.mxu0 %v5039_v7  ;;  %3658 = vmatprep.subr.mxu1 %v4180_v0  ;;  %v1647_v17 = vand.u32 4294901760, %v1646_v60 }
 0x1d3   :  { %3621 = vmatprep.subr.mxu0 %v4180_v0  ;;  %3659 = vmatpush3.msra.mxu1 %v1598_v49  ;;  %v1639_v49 = vsub.f32 %v5143_v26, %v5731_v51  ;;  %v1653_v15 = vsub.f32 %v5153_v44, %v5729_v63 }
 0x1d4   :  { %3622 = vmatpush3.msra.mxu0 %v5051_v23  ;;  %3660 = vmatprep.subr.mxu1 %v4180_v0 }
 0x1d5   :  { %3623 = vmatprep.subr.mxu0 %v4180_v0  ;;  %3661 = vmatpush3.msra.mxu1 %v1605_v16  ;;  %v1640_v16 = vand.u32 4294901760, %v1639_v49  ;;  %v1654_v55 = vand.u32 4294901760, %v1653_v15 }
 0x1d6   :  { %3624 = vmatpush3.msra.mxu0 %v5058_v61  ;;  %3662 = vmatprep.subr.mxu1 %v4180_v0 }
 0x1d7   :  { %3625 = vmatprep.subr.mxu0 %v4180_v0  ;;  %3663 = vmatpush3.msra.mxu1 %v1612_v57 }
 0x1d8   :  { %3626 = vmatpush3.msra.mxu0 %v5071_v34  ;;  %3664 = vmatprep.subr.mxu1 %v4180_v0 }
 0x1d9   :  { %3627 = vmatprep.subr.mxu0 %v4180_v0  ;;  %3665 = vmatpush3.msra.mxu1 %v1619_v29 }
 0x1da   :  { %3628 = vmatpush3.msra.mxu0 %v5081_v50  ;;  %3666 = vmatprep.subr.mxu1 %v4180_v0 }
 0x1db   :  { %3629 = vmatprep.subr.mxu0 %v4180_v0  ;;  %3667 = vmatpush3.msra.mxu1 %v1626_v4 }
 0x1dc   :  { %3630 = vmatpush3.msra.mxu0 %v5096_v43  ;;  %3668 = vmatprep.subr.mxu1 %v4180_v0 }
 0x1dd   :  { %3631 = vmatprep.subr.mxu0 %v4180_v0  ;;  %3669 = vmatpush3.msra.mxu1 %v1633_v25  ;;  %v2778_v25 = vld [vmem:[%s5719_s4] ss:$0 sm:$0xff] }
 0x1de   :  { %3632 = vmatpush3.msra.mxu0 %v5109_v12  ;;  %3670 = vmatprep.subr.mxu1 %v4180_v0 }
 0x1df   :  { %3633 = vmatprep.subr.mxu0 %v4180_v0  ;;  %3671 = vmatpush3.msra.mxu1 %v1640_v16 }
 0x1e0   :  { %3634 = vmatpush3.msra.mxu0 %v5117_v46  ;;  %3672 = vmatprep.subr.mxu1 %v4180_v0 }
 0x1e1   :  { %3635 = vmatprep.subr.mxu0 %v4180_v0  ;;  %3673 = vmatpush3.msra.mxu1 %v1647_v17 }
 0x1e2   :  { %3636 = vmatpush3.msra.mxu0 %v5131_v54  ;;  %3674 = vmatprep.subr.mxu1 %v4180_v0 }
 0x1e3   :  { %3637 = vmatprep.subr.mxu0 %v4180_v0  ;;  %3675 = vmatpush3.msra.mxu1 %v1654_v55 }
 0x1e4   :  { %3638 = vmatpush3.msra.mxu0 %v5135_v41  ;;  %3714 = vmatprep.subr.mxu1 %v4180_v0 }
 0x1e5   :  { %3639 = vmatprep.subr.mxu0 %v4180_v0 }
 0x1e6   :  { %3640 = vmatpush3.msra.mxu0 %v5137_v28 }
 0x1e7   :  { %3679 = vmatprep.subr.mxu0 %v4180_v0 }
 0x23d   :  { %v1026_v57 = vpop.f32.mrf.mxu1 }
 0x23f   :  { %v3468_v3 = vpop.f32.mrf.mxu1 }
 0x245   :  { %v875_v56 = vpop.f32.mrf.mxu0 }
 0x246   :  { %v876_v49 = vadd.f32 %v2778_v25, %v875_v56 }
 0x247   :  { %v3433_v36 = vpop.f32.mrf.mxu0 }
 0x248   :  { %v1027_v15 = vadd.f32 %v1026_v57, %v876_v49 }
 0x25d   :  { %v1219_v29 = vpop.f32.mrf.mxu1 }
 0x25f   :  { %v3538_v31 = vpop.f32.mrf.mxu1 }
 0x266   :  { %v1130_v58 = vpop.f32.mrf.mxu0 }
 0x267   :  { %v1131_v17 = vadd.f32 %v1130_v58, %v1027_v15  ;;  %v2101_v58 = vld [vmem:[#allocation10 + $0x30] sm:$0xff] }
 0x268   :  { %v3503_v4 = vpop.f32.mrf.mxu0 }
 0x269   :  { %v1220_v55 = vadd.f32 %v1219_v29, %v1131_v17 }
 0x27f   :  { %v1425_v60 = vpop.f32.mrf.mxu1 }
 0x281   :  { %v3608_v16 = vpop.f32.mrf.mxu1 }
 0x282   :  { %v2100_v16 = vld [vmem:[#allocation10 + $0x28] sm:$0xff] }
 0x287   :  { %v1338_v63 = vpop.f32.mrf.mxu0 }
 0x288   :  { %v1339_v5 = vadd.f32 %v1338_v63, %v1220_v55 }
 0x289   :  { %v3573_v51 = vpop.f32.mrf.mxu0 }
 0x28a   :  { %v1426_v3 = vadd.f32 %v1425_v60, %v1339_v5  ;;  %v5443_v60 = vand.u32 4294901760, %v2101_v58 }
 0x28c   :  { %4041 = vtanh.f32 %v1426_v3  ;;  %v5456_v3 = vsub.f32 %v2101_v58, %v5443_v60 }
 0x299   :  { %v4042_v36 = vpop.eup %4041 }
 0x29a   :  { %v5186_v48 = vand.u32 4294901760, %v4042_v36 }
 0x29c   :  { %3677 = vmatmul.mubr.f32.vlgmr.msra.gmra.mxu1 %v5186_v48  ;;  %v5190_v31 = vsub.f32 %v4042_v36, %v5186_v48  ;;  %v5458_v36 = vand.u32 4294901760, %v2100_v16 }
 0x29d   :  { %3715 = vmatpush3.msra.mxu1 %v4991_v18  ;;  %3746 = vmatprep.mubr.msk.f32.mxu1 %vm4181_vm0, %v4180_v0 }
 0x29e   :  { %3716 = vmatprep.subr.mxu1 %v4180_v0  ;;  %v1536_v63 = vand.u32 4294901760, %v5190_v31 }
 0x29f   :  { %3717 = vmatpush3.msra.mxu1 %v4993_v20 }
 0x2a0   :  { %3718 = vmatprep.subr.mxu1 %v4180_v0  ;;  %v1537_v51 = vsub.f32 %v5190_v31, %v1536_v63 }
 0x2a1   :  { %3719 = vmatpush3.msra.mxu1 %v5015_v59 }
 0x2a2   :  { %3720 = vmatprep.subr.mxu1 %v4180_v0  ;;  %v1538_v5 = vand.u32 4294901760, %v1537_v51 }
 0x2a3   :  { %3721 = vmatpush3.msra.mxu1 %v5020_v13 }
 0x2a4   :  { %3722 = vmatprep.subr.mxu1 %v4180_v0  ;;  %3642 = vmatmul.mubr.f32.vlgmr.msra.gmra.mxu0 %v1538_v5 }
 0x2a5   :  { %3680 = vmatpush3.msra.mxu0 %v4996_v21  ;;  %3723 = vmatpush3.msra.mxu1 %v5028_v52  ;;  %v5743_v21 = vand.u32 4294901760, %v5150_v42 }
 0x2a6   :  { %3681 = vmatprep.subr.mxu0 %v4180_v0  ;;  %3724 = vmatprep.subr.mxu1 %v4180_v0 }
 0x2a7   :  { %3682 = vmatpush3.msra.mxu0 %v4999_v30  ;;  %3725 = vmatpush3.msra.mxu1 %v5039_v7  ;;  %v5744_v30 = vand.u32 4294901760, %v5153_v44 }
 0x2a8   :  { %3683 = vmatprep.subr.mxu0 %v4180_v0  ;;  %3726 = vmatprep.subr.mxu1 %v4180_v0 }
 0x2a9   :  { %3684 = vmatpush3.msra.mxu0 %v5018_v8  ;;  %3727 = vmatpush3.msra.mxu1 %v5051_v23 }
 0x2aa   :  { %3685 = vmatprep.subr.mxu0 %v4180_v0  ;;  %3728 = vmatprep.subr.mxu1 %v4180_v0 }
 0x2ab   :  { %3686 = vmatpush3.msra.mxu0 %v5026_v38  ;;  %3729 = vmatpush3.msra.mxu1 %v5058_v61 }
 0x2ac   :  { %3687 = vmatprep.subr.mxu0 %v4180_v0  ;;  %3730 = vmatprep.subr.mxu1 %v4180_v0 }
 0x2ad   :  { %3688 = vmatpush3.msra.mxu0 %v5037_v2  ;;  %3731 = vmatpush3.msra.mxu1 %v5071_v34 }
 0x2ae   :  { %3689 = vmatprep.subr.mxu0 %v4180_v0  ;;  %3732 = vmatprep.subr.mxu1 %v4180_v0 }
 0x2af   :  { %3690 = vmatpush3.msra.mxu0 %v5048_v22  ;;  %3733 = vmatpush3.msra.mxu1 %v5081_v50  ;;  %v2108_v22 = vld [vmem:[#allocation10 + $0x68] sm:$0xff] }
 0x2b0   :  { %3691 = vmatprep.subr.mxu0 %v4180_v0  ;;  %3734 = vmatprep.subr.mxu1 %v4180_v0 }
 0x2b1   :  { %3692 = vmatpush3.msra.mxu0 %v5062_v19  ;;  %3735 = vmatpush3.msra.mxu1 %v5096_v43 }
 0x2b2   :  { %3693 = vmatprep.subr.mxu0 %v4180_v0  ;;  %3736 = vmatprep.subr.mxu1 %v4180_v0 }
 0x2b3   :  { %3694 = vmatpush3.msra.mxu0 %v5069_v9  ;;  %3737 = vmatpush3.msra.mxu1 %v5109_v12  ;;  %v2106_v9 = vld [vmem:[#allocation10 + $0x58] sm:$0xff] }
 0x2b4   :  { %3695 = vmatprep.subr.mxu0 %v4180_v0  ;;  %3738 = vmatprep.subr.mxu1 %v4180_v0 }
 0x2b5   :  { %3696 = vmatpush3.msra.mxu0 %v5079_v33  ;;  %3739 = vmatpush3.msra.mxu1 %v5117_v46  ;;  %v2105_v33 = vld [vmem:[#allocation10 + $0x50] sm:$0xff] }
 0x2b6   :  { %3697 = vmatprep.subr.mxu0 %v4180_v0  ;;  %3740 = vmatprep.subr.mxu1 %v4180_v0 }
 0x2b7   :  { %3698 = vmatpush3.msra.mxu0 %v5094_v27  ;;  %3741 = vmatpush3.msra.mxu1 %v5131_v54 }
 0x2b8   :  { %3699 = vmatprep.subr.mxu0 %v4180_v0  ;;  %3742 = vmatprep.subr.mxu1 %v4180_v0 }
 0x2b9   :  { %3700 = vmatpush3.msra.mxu0 %v5106_v11  ;;  %3743 = vmatpush3.msra.mxu1 %v5135_v41 }
 0x2ba   :  { %3701 = vmatprep.subr.mxu0 %v4180_v0  ;;  %3744 = vmatprep.subr.mxu1 %v4180_v0 }
 0x2bb   :  { %3702 = vmatpush3.msra.mxu0 %v5121_v47  ;;  %3745 = vmatpush3.msra.mxu1 %v5137_v28 }
 0x2bc   :  { %3703 = vmatprep.subr.mxu0 %v4180_v0  ;;  %3747 = vmatmul.mubr.f32.vlgmr.msra.gmra.mxu1 %v1536_v63  ;;  %v2099_v63 = vld [vmem:[#allocation10 + $0x20] sm:$0xff] }
 0x2bd   :  { %3784 = vmatprep.subr.mxu1 %v4180_v0  ;;  %3704 = vmatpush3.msra.mxu0 %v5129_v32 }
 0x2be   :  { %3785 = vmatpush3.msra.mxu1 %v4991_v18  ;;  %3705 = vmatprep.subr.mxu0 %v4180_v0  ;;  %v5741_v18 = vand.u32 4294901760, %v5129_v32  ;;  %v2103_v32 = vld [vmem:[#allocation10 + $0x40] sm:$0xff] }
 0x2bf   :  { %3786 = vmatprep.subr.mxu1 %v4180_v0  ;;  %3706 = vmatpush3.msra.mxu0 %v5143_v26 }
 0x2c0   :  { %3787 = vmatpush3.msra.mxu1 %v4993_v20  ;;  %3707 = vmatprep.subr.mxu0 %v4180_v0  ;;  %v5742_v20 = vand.u32 4294901760, %v5143_v26  ;;  %v2102_v26 = vld [vmem:[#allocation10 + $0x38] sm:$0xff] }
 0x2c1   :  { %3788 = vmatprep.subr.mxu1 %v4180_v0  ;;  %3708 = vmatpush3.msra.mxu0 %v5150_v42  ;;  %v5433_v56 = vand.u32 4294901760, %v2102_v26 }
 0x2c2   :  { %3789 = vmatpush3.msra.mxu1 %v5015_v59  ;;  %3709 = vmatprep.subr.mxu0 %v4180_v0 }
 0x2c3   :  { %3790 = vmatprep.subr.mxu1 %v4180_v0  ;;  %3710 = vmatpush3.msra.mxu0 %v5153_v44  ;;  %v5441_v49 = vsub.f32 %v2102_v26, %v5433_v56 }
 0x2c4   :  { %3711 = vmatprep.mubr.msk.f32.mxu0 %vm4181_vm0, %v4180_v0  ;;  %3791 = vmatpush3.msra.mxu1 %v5020_v13 }
 0x2c5   :  { %3712 = vmatmul.mubr.f32.vlgmr.msra.gmra.mxu0 %v5190_v31  ;;  %3749 = vmatprep.subr.mxu0 %v4180_v0  ;;  %v2268_v55 = vand.u32 4294901760, %v5441_v49 }
 0x2c6   :  { %3792 = vmatprep.subr.mxu1 %v4180_v0  ;;  %3750 = vmatpush3.msra.mxu0 %v1547_v35  ;;  %v2110_v35 = vld [vmem:[#allocation10 + $0x78] sm:$0xff] }
 0x2c7   :  { %3793 = vmatpush3.msra.mxu1 %v5028_v52  ;;  %3751 = vmatprep.subr.mxu0 %v4180_v0  ;;  %v5353_v59 = vand.u32 4294901760, %v2110_v35  ;;  %v2269_v5 = vsub.f32 %v5441_v49, %v2268_v55 }
 0x2c8   :  { %3794 = vmatprep.subr.mxu1 %v4180_v0  ;;  %3752 = vmatpush3.msra.mxu0 %v1554_v40  ;;  %v2109_v40 = vld [vmem:[#allocation10 + $0x70] sm:$0xff] }
 0x2c9   :  { %3795 = vmatpush3.msra.mxu1 %v5039_v7  ;;  %3753 = vmatprep.subr.mxu0 %v4180_v0  ;;  %v5355_v8 = vand.u32 4294901760, %v2109_v40  ;;  %v5358_v13 = vsub.f32 %v2110_v35, %v5353_v59  ;;  %v2270_v35 = vand.u32 4294901760, %v2269_v5 }
 0x2ca   :  { %3796 = vmatprep.subr.mxu1 %v4180_v0  ;;  %3754 = vmatpush3.msra.mxu0 %v1561_v37 }
 0x2cb   :  { %3797 = vmatpush3.msra.mxu1 %v5051_v23  ;;  %3755 = vmatprep.subr.mxu0 %v4180_v0  ;;  %v5361_v37 = vsub.f32 %v2109_v40, %v5355_v8  ;;  %v2212_v38 = vand.u32 4294901760, %v5358_v13  ;;  %v5377_v23 = vand.u32 4294901760, %v2108_v22 }
 0x2cc   :  { %3798 = vmatprep.subr.mxu1 %v4180_v0  ;;  %3756 = vmatpush3.msra.mxu0 %v1568_v1 }
 0x2cd   :  { %3799 = vmatpush3.msra.mxu1 %v5058_v61  ;;  %3757 = vmatprep.subr.mxu0 %v4180_v0  ;;  %v2219_v52 = vand.u32 4294901760, %v5361_v37  ;;  %v2213_v1 = vsub.f32 %v5358_v13, %v2212_v38  ;;  %v5380_v61 = vsub.f32 %v2108_v22, %v5377_v23 }
 0x2ce   :  { %3800 = vmatprep.subr.mxu1 %v4180_v0  ;;  %3758 = vmatpush3.msra.mxu0 %v1575_v6 }
 0x2cf   :  { %3801 = vmatpush3.msra.mxu1 %v5071_v34  ;;  %3759 = vmatprep.subr.mxu0 %v4180_v0  ;;  %v2220_v2 = vsub.f32 %v5361_v37, %v2219_v52  ;;  %v2214_v7 = vand.u32 4294901760, %v2213_v1  ;;  %v2226_v34 = vand.u32 4294901760, %v5380_v61 }
 0x2d0   :  { %3802 = vmatprep.subr.mxu1 %v4180_v0  ;;  %3760 = vmatpush3.msra.mxu0 %v1582_v53  ;;  %v2107_v53 = vld [vmem:[#allocation10 + $0x60] sm:$0xff] }
 0x2d1   :  { %3803 = vmatpush3.msra.mxu1 %v5081_v50  ;;  %3761 = vmatprep.subr.mxu0 %v4180_v0  ;;  %v2221_v6 = vand.u32 4294901760, %v2220_v2  ;;  %v5382_v19 = vand.u32 4294901760, %v2107_v53  ;;  %v2227_v50 = vsub.f32 %v5380_v61, %v2226_v34 }
 0x2d2   :  { %3804 = vmatprep.subr.mxu1 %v4180_v0  ;;  %3762 = vmatpush3.msra.mxu0 %v1589_v62 }
 0x2d3   :  { %3805 = vmatpush3.msra.mxu1 %v5096_v43  ;;  %3763 = vmatprep.subr.mxu0 %v4180_v0  ;;  %v5388_v62 = vsub.f32 %v2107_v53, %v5382_v19  ;;  %v5401_v43 = vand.u32 4294901760, %v2105_v33  ;;  %v2228_v11 = vand.u32 4294901760, %v2227_v50  ;;  %v2096_v50 = vld [vmem:[#allocation10 + $0x8] sm:$0xff] }
 0x2d4   :  { %3806 = vmatprep.subr.mxu1 %v4180_v0  ;;  %3764 = vmatpush3.msra.mxu0 %v1596_v14  ;;  %v5390_v14 = vand.u32 4294901760, %v2106_v9 }
 0x2d5   :  { %3807 = vmatpush3.msra.mxu1 %v5109_v12  ;;  %3765 = vmatprep.subr.mxu0 %v4180_v0 }
 0x2d6   :  { %3808 = vmatprep.subr.mxu1 %v4180_v0  ;;  %3766 = vmatpush3.msra.mxu0 %v1603_v24  ;;  %v2233_v24 = vand.u32 4294901760, %v5388_v62  ;;  %v5399_v27 = vsub.f32 %v2106_v9, %v5390_v14 }
 0x2d7   :  { %3809 = vmatpush3.msra.mxu1 %v5117_v46  ;;  %3767 = vmatprep.subr.mxu0 %v4180_v0  ;;  %v5410_v46 = vsub.f32 %v2105_v33, %v5401_v43 }
 0x2d8   :  { %3810 = vmatprep.subr.mxu1 %v4180_v0  ;;  %3768 = vmatpush3.msra.mxu0 %v1610_v10  ;;  %v2104_v10 = vld [vmem:[#allocation10 + $0x48] sm:$0xff]  ;;  %v2234_v12 = vsub.f32 %v5388_v62, %v2233_v24 }
 0x2d9   :  { %3811 = vmatpush3.msra.mxu1 %v5131_v54  ;;  %3769 = vmatprep.subr.mxu0 %v4180_v0  ;;  %v5413_v47 = vand.u32 4294901760, %v2104_v10 }
 0x2da   :  { %3812 = vmatprep.subr.mxu1 %v4180_v0  ;;  %3770 = vmatpush3.msra.mxu0 %v1617_v45  ;;  %v2240_v45 = vand.u32 4294901760, %v5399_v27  ;;  %v2235_v54 = vand.u32 4294901760, %v2234_v12  ;;  %v5497_v12 = vand.u32 4294901760, %v2096_v50 }
 0x2db   :  { %3813 = vmatpush3.msra.mxu1 %v5135_v41  ;;  %3771 = vmatprep.subr.mxu0 %v4180_v0  ;;  %v2247_v41 = vand.u32 4294901760, %v5410_v46 }
 0x2dc   :  { %3814 = vmatprep.subr.mxu1 %v4180_v0  ;;  %3772 = vmatpush3.msra.mxu0 %v1624_v39  ;;  %v2241_v39 = vsub.f32 %v5399_v27, %v2240_v45 }
 0x2dd   :  { %3815 = vmatpush3.msra.mxu1 %v5137_v28  ;;  %3816 = vmatprep.mubr.msk.f32.mxu1 %vm4181_vm0, %v4180_v0  ;;  %v5420_v28 = vand.u32 4294901760, %v2103_v32  ;;  %v2248_v44 = vsub.f32 %v5410_v46, %v2247_v41 }
 0x2de   :  { %3773 = vmatprep.subr.mxu0 %v4180_v0  ;;  %3817 = vmatmul.mubr.f32.vlgmr.msra.gmra.mxu1 %v5186_v48  ;;  %v2242_v42 = vand.u32 4294901760, %v2241_v39 }
 0x2df   :  { %3774 = vmatpush3.msra.mxu0 %v5741_v18  ;;  %3781 = vmatprep.mubr.msk.f32.mxu0 %vm4181_vm0, %v4180_v0  ;;  %v5431_v57 = vsub.f32 %v2103_v32, %v5420_v28  ;;  %v2249_v4 = vand.u32 4294901760, %v2248_v44  ;;  %v2275_v18 = vand.u32 4294901760, %v5456_v3  ;;  %v5512_v44 = vsub.f32 %v2096_v50, %v5497_v12 }
 0x2e0   :  { %3775 = vmatprep.subr.mxu0 %v4180_v0  ;;  %3854 = vmatprep.subr.mxu1 %v4180_v0 }
 0x2e1   :  { %3776 = vmatpush3.msra.mxu0 %v5742_v20  ;;  %3886 = vmatprep.mubr.msk.f32.mxu1 %vm4181_vm0, %v4180_v0  ;;  %v2261_v25 = vand.u32 4294901760, %v5431_v57  ;;  %v5468_v20 = vsub.f32 %v2100_v16, %v5458_v36  ;;  %v2276_v40 = vsub.f32 %v5456_v3, %v2275_v18 }
 0x2e2   :  { %3777 = vmatprep.subr.mxu0 %v4180_v0  ;;  %3855 = vmatpush3.msra.mxu1 %v2214_v7 }
 0x2e3   :  { %3778 = vmatpush3.msra.mxu0 %v5743_v21  ;;  %3856 = vmatprep.subr.mxu1 %v4180_v0  ;;  %v2262_v17 = vsub.f32 %v5431_v57, %v2261_v25  ;;  %v5471_v21 = vand.u32 4294901760, %v2099_v63  ;;  %v2282_v1 = vand.u32 4294901760, %v5468_v20  ;;  %v2277_v22 = vand.u32 4294901760, %v2276_v40 }
 0x2e4   :  { %3779 = vmatprep.subr.mxu0 %v4180_v0  ;;  %3857 = vmatpush3.msra.mxu1 %v2221_v6  ;;  %v2097_v6 = vld [vmem:[#allocation10 + $0x10] sm:$0xff] }
 0x2e5   :  { %3780 = vmatpush3.msra.mxu0 %v5744_v30  ;;  %3858 = vmatprep.subr.mxu1 %v4180_v0  ;;  %v2263_v51 = vand.u32 4294901760, %v2262_v17  ;;  %v2098_v30 = vld [vmem:[#allocation10 + $0x18] sm:$0xff]  ;;  %v5483_v7 = vsub.f32 %v2099_v63, %v5471_v21  ;;  %v2283_v53 = vsub.f32 %v5468_v20, %v2282_v1  ;;  %v5493_v33 = vand.u32 4294901760, %v2097_v6 }
 0x2e6   :  { %3782 = vmatmul.mubr.f32.vlgmr.msra.gmra.mxu0 %v5186_v48  ;;  %3819 = vmatprep.subr.mxu0 %v4180_v0  ;;  %v5424_v48 = vsub.f32 %v2104_v10, %v5413_v47  ;;  %v5479_v2 = vand.u32 4294901760, %v2098_v30  ;;  %v2095_v10 = vld [vmem:[#allocation10] sm:$0xff]  ;;  %v5734_v17 = vand.u32 4294901760, %v5512_v44 }
 0x2e7   :  { %3851 = vmatprep.mubr.msk.f32.mxu0 %vm4181_vm0, %v4180_v0  ;;  %3820 = vmatpush3.msra.mxu0 %v5353_v59  ;;  %v5499_v32 = vand.u32 4294901760, %v2095_v10  ;;  %v5505_v26 = vsub.f32 %v2097_v6, %v5493_v33 }
 0x2e8   :  { %3821 = vmatprep.subr.mxu0 %v4180_v0  ;;  %3859 = vmatpush3.msra.mxu1 %v2228_v11  ;;  %v2254_v29 = vand.u32 4294901760, %v5424_v48  ;;  %v5491_v9 = vsub.f32 %v2098_v30, %v5479_v2  ;;  %v2289_v11 = vand.u32 4294901760, %v5483_v7  ;;  %v2311_v5 = vsub.f32 %v5512_v44, %v5734_v17 }
 0x2e9   :  { %3822 = vmatpush3.msra.mxu0 %v5355_v8  ;;  %3860 = vmatprep.subr.mxu1 %v4180_v0  ;;  %v5515_v58 = vsub.f32 %v2095_v10, %v5499_v32 }
 0x2ea   :  { %3823 = vmatprep.subr.mxu0 %v4180_v0  ;;  %3861 = vmatpush3.msra.mxu1 %v2235_v54  ;;  %v2255_v15 = vsub.f32 %v5424_v48, %v2254_v29  ;;  %v2284_v54 = vand.u32 4294901760, %v2283_v53  ;;  %v5736_v39 = vand.u32 4294901760, %v5491_v9  ;;  %v2312_v40 = vand.u32 4294901760, %v2311_v5 }
 0x2eb   :  { %3824 = vmatpush3.msra.mxu0 %v5377_v23  ;;  %3862 = vmatprep.subr.mxu1 %v4180_v0 }
 0x2ec   :  { %3825 = vmatprep.subr.mxu0 %v4180_v0  ;;  %3863 = vmatpush3.msra.mxu1 %v2242_v42  ;;  %v2256_v31 = vand.u32 4294901760, %v2255_v15  ;;  %v2290_v42 = vsub.f32 %v5483_v7, %v2289_v11  ;;  %v5735_v15 = vand.u32 4294901760, %v5505_v26 }
 0x2ed   :  { %3826 = vmatpush3.msra.mxu0 %v5382_v19  ;;  %3864 = vmatprep.subr.mxu1 %v4180_v0 }
 0x2ee   :  { %3827 = vmatprep.subr.mxu0 %v4180_v0  ;;  %3865 = vmatpush3.msra.mxu1 %v2249_v4  ;;  %v2297_v4 = vsub.f32 %v5491_v9, %v5736_v39  ;;  %v2291_v16 = vand.u32 4294901760, %v2290_v42 }
 0x2ef   :  { %3828 = vmatpush3.msra.mxu0 %v5390_v14  ;;  %3866 = vmatprep.subr.mxu1 %v4180_v0 }
 0x2f0   :  { %3829 = vmatprep.subr.mxu0 %v4180_v0  ;;  %3867 = vmatpush3.msra.mxu1 %v2256_v31  ;;  %v5733_v31 = vand.u32 4294901760, %v5515_v58  ;;  %v2298_v63 = vand.u32 4294901760, %v2297_v4 }
 0x2f1   :  { %3830 = vmatpush3.msra.mxu0 %v5401_v43  ;;  %3868 = vmatprep.subr.mxu1 %v4180_v0 }
 0x2f2   :  { %3831 = vmatprep.subr.mxu0 %v4180_v0  ;;  %3869 = vmatpush3.msra.mxu1 %v2263_v51  ;;  %v2304_v51 = vsub.f32 %v5505_v26, %v5735_v15  ;;  %v2318_v30 = vsub.f32 %v5515_v58, %v5733_v31 }
 0x2f3   :  { %3832 = vmatpush3.msra.mxu0 %v5413_v47  ;;  %3870 = vmatprep.subr.mxu1 %v4180_v0 }
 0x2f4   :  { %3833 = vmatprep.subr.mxu0 %v4180_v0  ;;  %3871 = vmatpush3.msra.mxu1 %v2270_v35  ;;  %v2305_v35 = vand.u32 4294901760, %v2304_v51  ;;  %v2319_v6 = vand.u32 4294901760, %v2318_v30 }
 0x2f5   :  { %3834 = vmatpush3.msra.mxu0 %v5420_v28  ;;  %3872 = vmatprep.subr.mxu1 %v4180_v0 }
 0x2f6   :  { %3835 = vmatprep.subr.mxu0 %v4180_v0  ;;  %3873 = vmatpush3.msra.mxu1 %v2277_v22 }
 0x2f7   :  { %3836 = vmatpush3.msra.mxu0 %v5433_v56  ;;  %3874 = vmatprep.subr.mxu1 %v4180_v0 }
 0x2f8   :  { %3837 = vmatprep.subr.mxu0 %v4180_v0  ;;  %3875 = vmatpush3.msra.mxu1 %v2284_v54 }
 0x2f9   :  { %3838 = vmatpush3.msra.mxu0 %v5443_v60  ;;  %3876 = vmatprep.subr.mxu1 %v4180_v0 }
 0x2fa   :  { %3839 = vmatprep.subr.mxu0 %v4180_v0  ;;  %3877 = vmatpush3.msra.mxu1 %v2291_v16 }
 0x2fb   :  { %3840 = vmatpush3.msra.mxu0 %v5458_v36  ;;  %3878 = vmatprep.subr.mxu1 %v4180_v0 }
 0x2fc   :  { %3841 = vmatprep.subr.mxu0 %v4180_v0  ;;  %3879 = vmatpush3.msra.mxu1 %v2298_v63  ;;  %v2779_v63 = vld [vmem:[%s5721_s6] ss:$0 sm:$0xff] }
 0x2fd   :  { %3842 = vmatpush3.msra.mxu0 %v5471_v21  ;;  %3880 = vmatprep.subr.mxu1 %v4180_v0 }
 0x2fe   :  { %3843 = vmatprep.subr.mxu0 %v4180_v0  ;;  %3881 = vmatpush3.msra.mxu1 %v2305_v35 }
 0x2ff   :  { %3844 = vmatpush3.msra.mxu0 %v5479_v2  ;;  %3882 = vmatprep.subr.mxu1 %v4180_v0 }
 0x300   :  { %3845 = vmatprep.subr.mxu0 %v4180_v0  ;;  %3883 = vmatpush3.msra.mxu1 %v2312_v40 }
 0x301   :  { %3846 = vmatpush3.msra.mxu0 %v5493_v33  ;;  %3884 = vmatprep.subr.mxu1 %v4180_v0 }
 0x302   :  { %3847 = vmatprep.subr.mxu0 %v4180_v0  ;;  %3885 = vmatpush3.msra.mxu1 %v2319_v6 }
 0x303   :  { %3848 = vmatpush3.msra.mxu0 %v5497_v12  ;;  %3924 = vmatprep.subr.mxu1 %v4180_v0 }
 0x304   :  { %3849 = vmatprep.subr.mxu0 %v4180_v0 }
 0x305   :  { %3850 = vmatpush3.msra.mxu0 %v5499_v32 }
 0x306   :  { %3889 = vmatprep.subr.mxu0 %v4180_v0 }
 0x35c   :  { %v1691_v22 = vpop.f32.mrf.mxu1 }
 0x35e   :  { %v3678_v53 = vpop.f32.mrf.mxu1 }
 0x364   :  { %v1540_v50 = vpop.f32.mrf.mxu0 }
 0x365   :  { %v1541_v51 = vadd.f32 %v2779_v63, %v1540_v50 }
 0x366   :  { %v3643_v10 = vpop.f32.mrf.mxu0 }
 0x367   :  { %v1692_v30 = vadd.f32 %v1691_v22, %v1541_v51 }
 0x37c   :  { %v1884_v54 = vpop.f32.mrf.mxu1 }
 0x37e   :  { %v3748_v42 = vpop.f32.mrf.mxu1 }
 0x385   :  { %v1795_v4 = vpop.f32.mrf.mxu0 }
 0x386   :  { %v1796_v40 = vadd.f32 %v1795_v4, %v1692_v30 }
 0x387   :  { %v3713_v16 = vpop.f32.mrf.mxu0 }
 0x388   :  { %v1885_v6 = vadd.f32 %v1884_v54, %v1796_v40 }
 0x39e   :  { %v2090_v5 = vpop.f32.mrf.mxu1 }
 0x3a0   :  { %v3818_v35 = vpop.f32.mrf.mxu1 }
 0x3a6   :  { %v2003_v31 = vpop.f32.mrf.mxu0 }
 0x3a7   :  { %v2004_v17 = vadd.f32 %v2003_v31, %v1885_v6 }
 0x3a8   :  { %v3783_v15 = vpop.f32.mrf.mxu0 }
 0x3a9   :  { %v2091_v53 = vadd.f32 %v2090_v5, %v2004_v17 }
 0x3ab   :  { %4043 = vtanh.f32 %v2091_v53 }
 0x3b8   :  { %v4044_v10 = vpop.eup %4043 }
 0x3b9   :  { %v5548_v39 = vand.u32 4294901760, %v4044_v10 }
 0x3bb   :  { %3887 = vmatmul.mubr.f32.vlgmr.msra.gmra.mxu1 %v5548_v39  ;;  %v5552_v42 = vsub.f32 %v4044_v10, %v5548_v39 }
 0x3bc   :  { %3925 = vmatpush3.msra.mxu1 %v5353_v59  ;;  %3956 = vmatprep.mubr.msk.f32.mxu1 %vm4181_vm0, %v4180_v0 }
 0x3bd   :  { %3926 = vmatprep.subr.mxu1 %v4180_v0  ;;  %v2201_v31 = vand.u32 4294901760, %v5552_v42 }
 0x3be   :  { %3927 = vmatpush3.msra.mxu1 %v5355_v8 }
 0x3bf   :  { %3928 = vmatprep.subr.mxu1 %v4180_v0  ;;  %v2202_v15 = vsub.f32 %v5552_v42, %v2201_v31 }
 0x3c0   :  { %3929 = vmatpush3.msra.mxu1 %v5377_v23 }
 0x3c1   :  { %3930 = vmatprep.subr.mxu1 %v4180_v0  ;;  %v2203_v17 = vand.u32 4294901760, %v2202_v15 }
 0x3c2   :  { %3931 = vmatpush3.msra.mxu1 %v5382_v19 }
 0x3c3   :  { %3932 = vmatprep.subr.mxu1 %v4180_v0  ;;  %3852 = vmatmul.mubr.f32.vlgmr.msra.gmra.mxu0 %v2203_v17 }
 0x3c4   :  { %3890 = vmatpush3.msra.mxu0 %v5358_v13  ;;  %3933 = vmatpush3.msra.mxu1 %v5390_v14  ;;  %v5747_v13 = vand.u32 4294901760, %v5512_v44 }
 0x3c5   :  { %3891 = vmatprep.subr.mxu0 %v4180_v0  ;;  %3934 = vmatprep.subr.mxu1 %v4180_v0 }
 0x3c6   :  { %3892 = vmatpush3.msra.mxu0 %v5361_v37  ;;  %3935 = vmatpush3.msra.mxu1 %v5401_v43  ;;  %v5748_v37 = vand.u32 4294901760, %v5515_v58 }
 0x3c7   :  { %3893 = vmatprep.subr.mxu0 %v4180_v0  ;;  %3936 = vmatprep.subr.mxu1 %v4180_v0 }
 0x3c8   :  { %3894 = vmatpush3.msra.mxu0 %v5380_v61  ;;  %3937 = vmatpush3.msra.mxu1 %v5413_v47 }
 0x3c9   :  { %3895 = vmatprep.subr.mxu0 %v4180_v0  ;;  %3938 = vmatprep.subr.mxu1 %v4180_v0 }
 0x3ca   :  { %3896 = vmatpush3.msra.mxu0 %v5388_v62  ;;  %3939 = vmatpush3.msra.mxu1 %v5420_v28 }
 0x3cb   :  { %3897 = vmatprep.subr.mxu0 %v4180_v0  ;;  %3940 = vmatprep.subr.mxu1 %v4180_v0 }
 0x3cc   :  { %3898 = vmatpush3.msra.mxu0 %v5399_v27  ;;  %3941 = vmatpush3.msra.mxu1 %v5433_v56 }
 0x3cd   :  { %3899 = vmatprep.subr.mxu0 %v4180_v0  ;;  %3942 = vmatprep.subr.mxu1 %v4180_v0 }
 0x3ce   :  { %3900 = vmatpush3.msra.mxu0 %v5410_v46  ;;  %3943 = vmatpush3.msra.mxu1 %v5443_v60 }
 0x3cf   :  { %3901 = vmatprep.subr.mxu0 %v4180_v0  ;;  %3944 = vmatprep.subr.mxu1 %v4180_v0 }
 0x3d0   :  { %3902 = vmatpush3.msra.mxu0 %v5424_v48  ;;  %3945 = vmatpush3.msra.mxu1 %v5458_v36 }
 0x3d1   :  { %3903 = vmatprep.subr.mxu0 %v4180_v0  ;;  %3946 = vmatprep.subr.mxu1 %v4180_v0 }
 0x3d2   :  { %3904 = vmatpush3.msra.mxu0 %v5431_v57  ;;  %3947 = vmatpush3.msra.mxu1 %v5471_v21 }
 0x3d3   :  { %3905 = vmatprep.subr.mxu0 %v4180_v0  ;;  %3948 = vmatprep.subr.mxu1 %v4180_v0 }
 0x3d4   :  { %3906 = vmatpush3.msra.mxu0 %v5441_v49  ;;  %3949 = vmatpush3.msra.mxu1 %v5479_v2 }
 0x3d5   :  { %3907 = vmatprep.subr.mxu0 %v4180_v0  ;;  %3950 = vmatprep.subr.mxu1 %v4180_v0 }
 0x3d6   :  { %3908 = vmatpush3.msra.mxu0 %v5456_v3  ;;  %3951 = vmatpush3.msra.mxu1 %v5493_v33 }
 0x3d7   :  { %3909 = vmatprep.subr.mxu0 %v4180_v0  ;;  %3952 = vmatprep.subr.mxu1 %v4180_v0 }
 0x3d8   :  { %3910 = vmatpush3.msra.mxu0 %v5468_v20  ;;  %3953 = vmatpush3.msra.mxu1 %v5497_v12 }
 0x3d9   :  { %3911 = vmatprep.subr.mxu0 %v4180_v0  ;;  %3954 = vmatprep.subr.mxu1 %v4180_v0 }
 0x3da   :  { %3912 = vmatpush3.msra.mxu0 %v5483_v7  ;;  %3955 = vmatpush3.msra.mxu1 %v5499_v32 }
 0x3db   :  { %3913 = vmatprep.subr.mxu0 %v4180_v0  ;;  %3957 = vmatmul.mubr.f32.vlgmr.msra.gmra.mxu1 %v2201_v31 }
 0x3dc   :  { %3994 = vmatprep.subr.mxu1 %v4180_v0  ;;  %3914 = vmatpush3.msra.mxu0 %v5491_v9 }
 0x3dd   :  { %3995 = vmatpush3.msra.mxu1 %v5353_v59  ;;  %3915 = vmatprep.subr.mxu0 %v4180_v0  ;;  %v5745_v59 = vand.u32 4294901760, %v5491_v9 }
 0x3de   :  { %3996 = vmatprep.subr.mxu1 %v4180_v0  ;;  %3916 = vmatpush3.msra.mxu0 %v5505_v26 }
 0x3df   :  { %3997 = vmatpush3.msra.mxu1 %v5355_v8  ;;  %3917 = vmatprep.subr.mxu0 %v4180_v0  ;;  %v5746_v8 = vand.u32 4294901760, %v5505_v26 }
 0x3e0   :  { %3998 = vmatprep.subr.mxu1 %v4180_v0  ;;  %3918 = vmatpush3.msra.mxu0 %v5512_v44 }
 0x3e1   :  { %3999 = vmatpush3.msra.mxu1 %v5377_v23  ;;  %3919 = vmatprep.subr.mxu0 %v4180_v0 }
 0x3e2   :  { %4000 = vmatprep.subr.mxu1 %v4180_v0  ;;  %3920 = vmatpush3.msra.mxu0 %v5515_v58 }
 0x3e3   :  { %3921 = vmatprep.mubr.msk.f32.mxu0 %vm4181_vm0, %v4180_v0  ;;  %4001 = vmatpush3.msra.mxu1 %v5382_v19 }
 0x3e4   :  { %3922 = vmatmul.mubr.f32.vlgmr.msra.gmra.mxu0 %v5552_v42  ;;  %3959 = vmatprep.subr.mxu0 %v4180_v0 }
 0x3e5   :  { %4002 = vmatprep.subr.mxu1 %v4180_v0  ;;  %3960 = vmatpush3.msra.mxu0 %v2212_v38 }
 0x3e6   :  { %4003 = vmatpush3.msra.mxu1 %v5390_v14  ;;  %3961 = vmatprep.subr.mxu0 %v4180_v0 }
 0x3e7   :  { %4004 = vmatprep.subr.mxu1 %v4180_v0  ;;  %3962 = vmatpush3.msra.mxu0 %v2219_v52 }
 0x3e8   :  { %4005 = vmatpush3.msra.mxu1 %v5401_v43  ;;  %3963 = vmatprep.subr.mxu0 %v4180_v0 }
 0x3e9   :  { %4006 = vmatprep.subr.mxu1 %v4180_v0  ;;  %3964 = vmatpush3.msra.mxu0 %v2226_v34 }
 0x3ea   :  { %4007 = vmatpush3.msra.mxu1 %v5413_v47  ;;  %3965 = vmatprep.subr.mxu0 %v4180_v0 }
 0x3eb   :  { %4008 = vmatprep.subr.mxu1 %v4180_v0  ;;  %3966 = vmatpush3.msra.mxu0 %v2233_v24  ;;  %v2780_v24 = vld [vmem:[%s5723_s8] ss:$0 sm:$0xff] }
 0x3ec   :  { %4009 = vmatpush3.msra.mxu1 %v5420_v28  ;;  %3967 = vmatprep.subr.mxu0 %v4180_v0 }
 0x3ed   :  { %4010 = vmatprep.subr.mxu1 %v4180_v0  ;;  %3968 = vmatpush3.msra.mxu0 %v2240_v45 }
 0x3ee   :  { %4011 = vmatpush3.msra.mxu1 %v5433_v56  ;;  %3969 = vmatprep.subr.mxu0 %v4180_v0 }
 0x3ef   :  { %4012 = vmatprep.subr.mxu1 %v4180_v0  ;;  %3970 = vmatpush3.msra.mxu0 %v2247_v41 }
 0x3f0   :  { %4013 = vmatpush3.msra.mxu1 %v5443_v60  ;;  %3971 = vmatprep.subr.mxu0 %v4180_v0 }
 0x3f1   :  { %4014 = vmatprep.subr.mxu1 %v4180_v0  ;;  %3972 = vmatpush3.msra.mxu0 %v2254_v29 }
 0x3f2   :  { %4015 = vmatpush3.msra.mxu1 %v5458_v36  ;;  %3973 = vmatprep.subr.mxu0 %v4180_v0 }
 0x3f3   :  { %4016 = vmatprep.subr.mxu1 %v4180_v0  ;;  %3974 = vmatpush3.msra.mxu0 %v2261_v25 }
 0x3f4   :  { %4017 = vmatpush3.msra.mxu1 %v5471_v21  ;;  %3975 = vmatprep.subr.mxu0 %v4180_v0 }
 0x3f5   :  { %4018 = vmatprep.subr.mxu1 %v4180_v0  ;;  %3976 = vmatpush3.msra.mxu0 %v2268_v55 }
 0x3f6   :  { %4019 = vmatpush3.msra.mxu1 %v5479_v2  ;;  %3977 = vmatprep.subr.mxu0 %v4180_v0 }
 0x3f7   :  { %4020 = vmatprep.subr.mxu1 %v4180_v0  ;;  %3978 = vmatpush3.msra.mxu0 %v2275_v18 }
 0x3f8   :  { %4021 = vmatpush3.msra.mxu1 %v5493_v33  ;;  %3979 = vmatprep.subr.mxu0 %v4180_v0 }
 0x3f9   :  { %4022 = vmatprep.subr.mxu1 %v4180_v0  ;;  %3980 = vmatpush3.msra.mxu0 %v2282_v1 }
 0x3fa   :  { %4023 = vmatpush3.msra.mxu1 %v5497_v12  ;;  %3981 = vmatprep.subr.mxu0 %v4180_v0 }
 0x3fb   :  { %4024 = vmatprep.subr.mxu1 %v4180_v0  ;;  %3982 = vmatpush3.msra.mxu0 %v2289_v11 }
 0x3fc   :  { %4025 = vmatpush3.msra.mxu1 %v5499_v32  ;;  %4026 = vmatprep.mubr.msk.f32.mxu1 %vm4181_vm0, %v4180_v0 }
 0x3fd   :  { %3983 = vmatprep.subr.mxu0 %v4180_v0  ;;  %4027 = vmatmul.mubr.f32.vlgmr.msra.gmra.mxu1 %v5548_v39 }
 0x3fe   :  { %3984 = vmatpush3.msra.mxu0 %v5745_v59  ;;  %3991 = vmatprep.mubr.msk.f32.mxu0 %vm4181_vm0, %v4180_v0 }
 0x3ff   :  { %3985 = vmatprep.subr.mxu0 %v4180_v0 }
 0x400   :  { %3986 = vmatpush3.msra.mxu0 %v5746_v8 }
 0x401   :  { %3987 = vmatprep.subr.mxu0 %v4180_v0 }
 0x402   :  { %3988 = vmatpush3.msra.mxu0 %v5747_v13 }
 0x403   :  { %3989 = vmatprep.subr.mxu0 %v4180_v0 }
 0x404   :  { %3990 = vmatpush3.msra.mxu0 %v5748_v37 }
 0x405   :  { %3992 = vmatmul.mubr.f32.vlgmr.msra.gmra.mxu0 %v5548_v39 }
 0x47b   :  { %v2356_v38 = vpop.f32.mrf.mxu1 }
 0x47d   :  { %v3888_v52 = vpop.f32.mrf.mxu1 }
 0x483   :  { %v2205_v23 = vpop.f32.mrf.mxu0 }
 0x484   :  { %v2206_v27 = vadd.f32 %v2780_v24, %v2205_v23 }
 0x485   :  { %v3853_v61 = vpop.f32.mrf.mxu0 }
 0x486   :  { %v2357_v0 = vadd.f32 %v2356_v38, %v2206_v27 }
 0x49b   :  { %v2549_v19 = vpop.f32.mrf.mxu1 }
 0x49d   :  { %v3958_v34 = vpop.f32.mrf.mxu1 }
 0x4a4   :  { %v2460_v62 = vpop.f32.mrf.mxu0 }
 0x4a5   :  { %v2461_v46 = vadd.f32 %v2460_v62, %v2357_v0 }
 0x4a6   :  { %v3923_v14 = vpop.f32.mrf.mxu0 }
 0x4a7   :  { %v2550_v47 = vadd.f32 %v2549_v19, %v2461_v46 }
 0x4bd   :  { %v2755_v43 = vpop.f32.mrf.mxu1 }
 0x4bf   :  { %v4028_v45 = vpop.f32.mrf.mxu1 }
 0x4c5   :  { %v2668_v41 = vpop.f32.mrf.mxu0 }
 0x4c6   :  { %v2669_v28 = vadd.f32 %v2668_v41, %v2550_v47 }
 0x4c7   :  { %v3993_v48 = vpop.f32.mrf.mxu0 }
 0x4c8   :  { %v2756_v57 = vadd.f32 %v2755_v43, %v2669_v28 }
 0x4ca   :  { %2759 = vst [vmem:[#allocation11] sm:$0xff] %v2756_v57 }
 0x4cb   :  { %4156 = shalt.err (!%p4153_p1)
}
 0x4cc   :  { %2769 = dma.vmem_to_hbm [thread:$0]  %s2767_s16, 128, %s5724_s9, [#allocation4]  }
 0x4cd   :  { %4171 = dma.done.wait [#allocation4], 128  }
 0x4ce   :  { %4172 = vsyncadd [#allocation4], 4294967168 }
 0x4cf   :  { %2773 = vsyncpa [#allocation3], 1 }
 0x4d0   :  { %2774 = vsyncpa [#allocation6], 1 }
 0x4d1   :  { %2775 = vsyncpa [#allocation9], 1 }
 0x4d2   :  { %2776 = vsyncpa [#allocation4], 1 }

</bundles_post_ra>
